<compile_context>
chip_gen: v5e
topology: v5e:2x2
jax: 0.10.0
libtpu: 0.0.40
codegen_flags: <defaults>
</compile_context>

<pallas_src>
import jax
import jax.numpy as jnp
from jax.experimental import pallas as pl
from jax.experimental.pallas import tpu as pltpu

BN_EPS = 1e-5
LANE = 128                            # output channels padded to a multiple of this
TM_TARGET = 512                       # rows per grid step (~85% of HBM roofline per docs)
VMEM_LIMIT_BYTES = 48 * 1024 * 1024   # explicit scoped-VMEM limit (fits v5e/v6e/v7x)


def _round_up(x, m):
    return (x + m - 1) // m * m


# -----------------------------------------------------------------------------
# Pass 1: tiled GEMM + global BatchNorm statistics.
#   grid = (G, M_tiles).  G sub-problems (1 for the stride-2 conv, 4 subpixel
#   phases for the transposed conv) share one BatchNorm, so sum / sumsq are
#   accumulated across the whole grid in resident (constant-block-index) outputs.
# -----------------------------------------------------------------------------
def _gemm_stats_kernel(p_ref, w_ref, y_ref, sum_ref, sq_ref):
    first = jnp.logical_and(pl.program_id(0) == 0, pl.program_id(1) == 0)

    @pl.when(first)
    def _():
        sum_ref[...] = jnp.zeros_like(sum_ref)
        sq_ref[...] = jnp.zeros_like(sq_ref)

    y = jnp.dot(p_ref[0], w_ref[0], preferred_element_type=jnp.float32)
    y_ref[0] = y
    sum_ref[...] += jnp.sum(y, axis=0, keepdims=True)
    sq_ref[...] += jnp.sum(y * y, axis=0, keepdims=True)


# -----------------------------------------------------------------------------
# Pass 2: y * scale + shift (BN folded), PReLU, optional fused residual add.
# -----------------------------------------------------------------------------
def _bn_prelu_kernel(a_ref, sc_ref, sh_ref, y_ref, o_ref):
    y = y_ref[0] * sc_ref[...] + sh_ref[...]
    a = a_ref[0]
    o_ref[0] = jnp.where(y >= 0.0, y, a * y)


def _bn_prelu_res_kernel(a_ref, sc_ref, sh_ref, y_ref, r_ref, o_ref):
    y = y_ref[0] * sc_ref[...] + sh_ref[...]
    a = a_ref[0]
    o_ref[0] = jnp.where(y >= 0.0, y, a * y) + r_ref[0]


# -----------------------------------------------------------------------------
# Driver: GEMM -> BatchNorm(train-mode batch stats) -> PReLU (-> + residual)
#   patches : [G, M, K]    f32   im2col rows (G sub-problems share one BN)
#   w_mats  : [G, K, Cout] f32   GEMM weights
#   residual: [G, M, Cout] f32 or None
#   returns : [G, M, Cout] f32
# -----------------------------------------------------------------------------
def _fused_conv_bn_prelu(patches, w_mats, gamma, beta, prelu_a, residual):
    G, M, K = patches.shape
    Cout = w_mats.shape[-1]
    Cpad = _round_up(Cout, LANE)                 # lane-dense output channels
    TM = min(TM_TARGET, _round_up(M, 8))
    M_pad = _round_up(M, TM)
    n_tiles = M_pad // TM
    grid = (G, n_tiles)

    # Zero row-padding keeps BN stats exact: 0-rows add 0 to sum/sumsq and the
    # mean/var below divide by the true element count G*M.
    if M_pad != M:
        patches = jnp.pad(patches, ((0, 0), (0, M_pad - M), (0, 0)))
    patches_bf = patches.astype(jnp.bfloat16)

    # Zero channel-padding: padded output channels stay exactly 0 through the GEMM.
    w_pad = jnp.zeros((G, K, Cpad), jnp.float32).at[:, :, :Cout].set(w_mats)
    w_bf = w_pad.astype(jnp.bfloat16)

    tile_spec = pl.BlockSpec((1, TM, Cpad), lambda g, i: (g, i, 0))
    chan_spec = pl.BlockSpec((1, Cpad), lambda g, i: (0, 0))
    smem_spec = pl.BlockSpec(memory_space=pltpu.MemorySpace.SMEM)

    y_pre, s1, s2 = pl.pallas_call(
        _gemm_stats_kernel,
        grid=grid,
        in_specs=[
            pl.BlockSpec((1, TM, K), lambda g, i: (g, i, 0)),      # patches tile
            pl.BlockSpec((1, K, Cpad), lambda g, i: (g, 0, 0)),    # per-phase weights
        ],
        out_specs=[tile_spec, chan_spec, chan_spec],
        out_shape=[
            jax.ShapeDtypeStruct((G, M_pad, Cpad), jnp.float32),   # pre-BN activations
            jax.ShapeDtypeStruct((1, Cpad), jnp.float32),          # sum_c
            jax.ShapeDtypeStruct((1, Cpad), jnp.float32),          # sumsq_c
        ],
        compiler_params=pltpu.CompilerParams(
            dimension_semantics=("arbitrary", "arbitrary"),
            vmem_limit_bytes=VMEM_LIMIT_BYTES),
    )(patches_bf, w_bf)

    # Tiny (1, Cpad) epilogue in plain JAX: fold BN + affine into scale/shift.
    count = float(G * M)
    mean = s1[0] / count
    var = jnp.maximum(s2[0] / count - mean * mean, 0.0)   # biased variance (PyTorch train mode)
    rstd = jax.lax.rsqrt(var + BN_EPS)
    gamma_p = jnp.zeros((Cpad,), jnp.float32).at[:Cout].set(gamma)
    beta_p = jnp.zeros((Cpad,), jnp.float32).at[:Cout].set(beta)
    scale = (gamma_p * rstd).reshape(1, Cpad)
    shift = (beta_p - mean * gamma_p * rstd).reshape(1, Cpad)

    pass2_params = pltpu.CompilerParams(
        dimension_semantics=("parallel", "parallel"),
        vmem_limit_bytes=VMEM_LIMIT_BYTES)
    out_shape = jax.ShapeDtypeStruct((G, M_pad, Cpad), jnp.float32)

    if residual is None:
        out = pl.pallas_call(
            _bn_prelu_kernel,
            grid=grid,
            in_specs=[smem_spec, chan_spec, chan_spec, tile_spec],
            out_specs=tile_spec,
            out_shape=out_shape,
            compiler_params=pass2_params,
        )(prelu_a, scale, shift, y_pre)
    else:
        res_pad = jnp.zeros((G, M_pad, Cpad), jnp.float32)
        res_pad = res_pad.at[:, :M, :Cout].set(residual)
        out = pl.pallas_call(
            _bn_prelu_res_kernel,
            grid=grid,
            in_specs=[smem_spec, chan_spec, chan_spec, tile_spec, tile_spec],
            out_specs=tile_spec,
            out_shape=out_shape,
            compiler_params=pass2_params,
        )(prelu_a, scale, shift, y_pre, res_pad)

    return out[:, :M, :Cout]


# -----------------------------------------------------------------------------
# ConvBlock: Conv2d(k=4, s=2, p=1, bias) -> BatchNorm2d(train stats) -> PReLU
#   NOTE: the conv bias is mathematically canceled by the train-mode BN mean
#   subtraction, so it is not fed to the kernel (zero numerical effect).
# -----------------------------------------------------------------------------
def conv_block(x_nhwc, params):
    w_oihw, _bias, gamma, beta, prelu_a = params
    cout, cin = w_oihw.shape[0], w_oihw.shape[1]
    n, h, w, _ = x_nhwc.shape
    ho, wo = h // 2, w // 2

    xp = jnp.pad(x_nhwc, ((0, 0), (1, 1), (1, 1), (0, 0)))
    cols = []
    for dy in range(4):
        for dx in range(4):
            cols.append(xp[:, dy:dy + 2 * ho:2, dx:dx + 2 * wo:2, :])
    patches = jnp.stack(cols, axis=3).reshape(1, n * ho * wo, 16 * cin)

    w_mat = jnp.transpose(w_oihw, (2, 3, 1, 0)).reshape(1, 16 * cin, cout)

    act = _fused_conv_bn_prelu(patches, w_mat, gamma, beta, prelu_a, residual=None)
    return act[0].reshape(n, ho, wo, cout)


# -----------------------------------------------------------------------------
# DeconvBlock: ConvTranspose2d(k=4, s=2, p=1) -> BatchNorm2d -> PReLU, with the
# "+ residual" of the decoder fused into the pass-2 kernel.  Subpixel form:
#   output (2m+py, 2n+px) = sum_{dy,dx in {0,1}} xp[m+py+dy, n+px+dx] *
#                           Wt[:, :, (3-py)-2*dy, (3-px)-2*dx]
# -----------------------------------------------------------------------------
def deconv_block(x_nhwc, params, residual_nhwc):
    wt, _bias, gamma, beta, prelu_a = params        # wt: [Cin, Cout, 4, 4]
    cin, cout = wt.shape[0], wt.shape[1]
    n, h, w, _ = x_nhwc.shape
    m_half = n * h * w

    xp = jnp.pad(x_nhwc, ((0, 0), (1, 1), (1, 1), (0, 0)))

    patch_list, wmat_list, res_list = [], [], []
    for py in range(2):
        for px in range(2):
            cols = []
            for dy in range(2):
                for dx in range(2):
                    cols.append(xp[:, py + dy:py + dy + h, px + dx:px + dx + w, :])
            patch_list.append(jnp.stack(cols, axis=3).reshape(m_half, 4 * cin))
            # 2x2 sub-kernel for this phase: [Cin, Cout, dy, dx]
            sub = jnp.stack([
                jnp.stack([wt[:, :, 3 - py, 3 - px], wt[:, :, 3 - py, 1 - px]], axis=-1),
                jnp.stack([wt[:, :, 1 - py, 3 - px], wt[:, :, 1 - py, 1 - px]], axis=-1),
            ], axis=-2)
            wmat_list.append(jnp.transpose(sub, (2, 3, 0, 1)).reshape(4 * cin, cout))
            res_list.append(residual_nhwc[:, py::2, px::2, :].reshape(m_half, cout))

    patches = jnp.stack(patch_list, axis=0)     # [4, m_half, 4*cin]
    w_mats = jnp.stack(wmat_list, axis=0)       # [4, 4*cin, cout]
    residual = jnp.stack(res_list, axis=0)      # [4, m_half, cout]

    act = _fused_conv_bn_prelu(patches, w_mats, gamma, beta, prelu_a, residual)

    # De-interleave the 4 subpixel phases back to [N, 2H, 2W, Cout].
    out = act.reshape(2, 2, n, h, w, cout)
    out = jnp.transpose(out, (2, 3, 0, 4, 1, 5)).reshape(n, 2 * h, 2 * w, cout)
    return out


# -----------------------------------------------------------------------------
# Decoder_MDCBlock1 forward (mode='iter1')
# -----------------------------------------------------------------------------
def decoder_mdcblock1_forward(ft_h_nchw, ft_l_list_nchw, params, num_ft):
    nft = num_ft - 1
    ft_h = jnp.transpose(ft_h_nchw, (0, 2, 3, 1))
    ft_l_list = [jnp.transpose(t, (0, 2, 3, 1)) for t in ft_l_list_nchw]
    n_l = len(ft_l_list)

    ft_h_list = []
    cur = ft_h
    for i in range(n_l):
        ft_h_list.append(cur)
        cur = conv_block(cur, params["down"][nft - n_l + i])

    ft_fusion = cur
    for i in range(n_l):
        # 'ft_fusion - ft_l' is a tiny elementwise op that XLA fuses with the
        # patch gather below; the '+ ft_h_list[...]' residual is fused inside
        # the Pallas pass-2 kernel.
        diff = ft_fusion - ft_l_list[i]
        ft_fusion = deconv_block(diff, params["up"][nft - i - 1],
                                 residual_nhwc=ft_h_list[n_l - i - 1])

    return jnp.transpose(ft_fusion, (0, 3, 1, 2))       # back to NCHW


# -----------------------------------------------------------------------------
# Deterministic parameter init (shapes follow the PyTorch __init__)
# -----------------------------------------------------------------------------
def init_params(key, num_filter, num_ft):
    nft = num_ft - 1
    down, up = [], []
    for i in range(nft):
        cin = num_filter * 2 ** i
        cout = num_filter * 2 ** (i + 1)
        key, k1, k2, k3, k4 = jax.random.split(key, 5)
        # down: Conv2d(cin -> cout, k=4), weight [cout, cin, 4, 4]; bias kept for
        # interface parity but unused (canceled exactly by train-mode BN).
        w = jax.random.normal(k1, (cout, cin, 4, 4), jnp.float32) * 0.1
        b = jax.random.normal(k2, (cout,), jnp.float32) * 0.1
        down.append((w, b,
                     jnp.ones((cout,), jnp.float32),
                     jnp.zeros((cout,), jnp.float32),
                     jnp.full((1,), 0.25, jnp.float32)))
        # up: ConvTranspose2d(cout -> cin, k=4), weight [cout, cin, 4, 4]
        wt = jax.random.normal(k3, (cout, cin, 4, 4), jnp.float32) * 0.1
        bt = jax.random.normal(k4, (cin,), jnp.float32) * 0.1
        up.append((wt, bt,
                   jnp.ones((cin,), jnp.float32),
                   jnp.zeros((cin,), jnp.float32),
                   jnp.full((1,), 0.25, jnp.float32)))
    return {"down": down, "up": up}


if __name__ == "__main__":
    num_filter = 4
    num_ft = 3            # -> 2 down_convs / 2 up_convs
    batch = 2

    key = jax.random.PRNGKey(0)
    key, kh, kl0, kl1, kp = jax.random.split(key, 5)

    # ft_h: highest-resolution feature, NCHW
    ft_h = jax.random.normal(kh, (batch, num_filter, 16, 16), jnp.float32)
    # ft_l_list[0] matches the deepest downsampled feature, ft_l_list[1] the next one up
    ft_l_list = [
        jax.random.normal(kl0, (batch, num_filter * 4, 4, 4), jnp.float32),
        jax.random.normal(kl1, (batch, num_filter * 2, 8, 8), jnp.float32),
    ]

    params = init_params(kp, num_filter, num_ft)

    fwd = jax.jit(decoder_mdcblock1_forward, static_argnums=(3,))
    out = fwd(ft_h, ft_l_list, params, num_ft)
    out = jax.block_until_ready(out)

    assert out.shape == (batch, num_filter, 16, 16), out.shape
    assert bool(jnp.all(jnp.isfinite(out)))
    print("KERNEL_OK")
</pallas_src>

<mosaic_0001>
module attributes {stable_mosaic.version = 11 : i64} {
  func.func @_bn_prelu_kernel(%arg0: i32, %arg1: i32, %arg2: memref<1xf32, #tpu.memory_space<smem>>, %arg3: memref<1x128xf32, #tpu.memory_space<vmem>>, %arg4: memref<1x128xf32, #tpu.memory_space<vmem>>, %arg5: memref<1x128x128xf32, #tpu.memory_space<vmem>>, %arg6: memref<1x128x128xf32, #tpu.memory_space<vmem>>) attributes {dimension_semantics = [#tpu.dimension_semantics<parallel>, #tpu.dimension_semantics<parallel>], iteration_bounds = array<i64: 1, 1>, scalar_prefetch = 0 : i64, scratch_operands = 0 : i64, tpu.core_type = #tpu.core_type<tc>, window_params = [{transform_indices = @transform_0, window_bounds = array<i64: 1>}, {pipeline_mode = #tpu.pipeline_mode<synchronous>, transform_indices = @transform_1, window_bounds = array<i64: 1, 128>}, {pipeline_mode = #tpu.pipeline_mode<synchronous>, transform_indices = @transform_2, window_bounds = array<i64: 1, 128>}, {transform_indices = @transform_3, window_bounds = array<i64: 1, 128, 128>}, {transform_indices = @transform_4, window_bounds = array<i64: 1, 128, 128>}]} {
    %c0 = arith.constant 0 : index
    %c0_0 = arith.constant 0 : index
    %c0_1 = arith.constant 0 : index
    %0 = vector.load %arg5[%c0, %c0_0, %c0_1] : memref<1x128x128xf32, #tpu.memory_space<vmem>>, vector<1x128x128xf32>
    %1 = vector.shape_cast %0 : vector<1x128x128xf32> to vector<128x128xf32>
    %c0_2 = arith.constant 0 : index
    %c0_3 = arith.constant 0 : index
    %2 = vector.load %arg3[%c0_2, %c0_3] : memref<1x128xf32, #tpu.memory_space<vmem>>, vector<1x128xf32>
    %3 = vector.broadcast %2 : vector<1x128xf32> to vector<128x128xf32>
    %4 = arith.mulf %1, %3 : vector<128x128xf32>
    %c0_4 = arith.constant 0 : index
    %c0_5 = arith.constant 0 : index
    %5 = vector.load %arg4[%c0_4, %c0_5] : memref<1x128xf32, #tpu.memory_space<vmem>>, vector<1x128xf32>
    %6 = vector.broadcast %5 : vector<1x128xf32> to vector<128x128xf32>
    %7 = arith.addf %4, %6 : vector<128x128xf32>
    %c0_6 = arith.constant 0 : index
    %8 = memref.load %arg2[%c0_6] : memref<1xf32, #tpu.memory_space<smem>>
    %cst = arith.constant 0.000000e+00 : f32
    %9 = vector.broadcast %cst : f32 to vector<128x128xf32>
    %10 = arith.cmpf oge, %7, %9 : vector<128x128xf32>
    %11 = vector.broadcast %8 : f32 to vector<128x128xf32>
    %12 = arith.mulf %11, %7 : vector<128x128xf32>
    %13 = arith.select %10, %7, %12 : vector<128x128xi1>, vector<128x128xf32>
    %c0_7 = arith.constant 0 : index
    %c0_8 = arith.constant 0 : index
    %c0_9 = arith.constant 0 : index
    %14 = vector.load %arg6[%c0_7, %c0_8, %c0_9] : memref<1x128x128xf32, #tpu.memory_space<vmem>>, vector<1x128x128xf32>
    %15 = vector.shape_cast %14 : vector<1x128x128xf32> to vector<128x128xf32>
    %16 = vector.shape_cast %13 : vector<128x128xf32> to vector<1x128x128xf32>
    tpu.vector_store %arg6[%c0_7, %c0_8, %c0_9], %16 {strides = array<i32>} : memref<1x128x128xf32, #tpu.memory_space<vmem>>, vector<1x128x128xf32>,
    return
  }
  func.func @transform_0(%arg0: i32, %arg1: i32) -> i32 {
    %c0_i32 = arith.constant 0 : i32
    %c0_i32_0 = arith.constant 0 : i32
    return %c0_i32 : i32
  }
  func.func @transform_1(%arg0: i32, %arg1: i32) -> (i32, i32) {
    %c0_i32 = arith.constant 0 : i32
    %c0_i32_0 = arith.constant 0 : i32
    %c0_i32_1 = arith.constant 0 : i32
    return %c0_i32, %c0_i32_0 : i32, i32
  }
  func.func @transform_2(%arg0: i32, %arg1: i32) -> (i32, i32) {
    %c0_i32 = arith.constant 0 : i32
    %c0_i32_0 = arith.constant 0 : i32
    %c0_i32_1 = arith.constant 0 : i32
    return %c0_i32, %c0_i32_0 : i32, i32
  }
  func.func @transform_3(%arg0: i32, %arg1: i32) -> (i32, i32, i32) {
    %c0_i32 = arith.constant 0 : i32
    %c0_i32_0 = arith.constant 0 : i32
    return %arg0, %arg1, %c0_i32 : i32, i32, i32
  }
  func.func @transform_4(%arg0: i32, %arg1: i32) -> (i32, i32, i32) {
    %c0_i32 = arith.constant 0 : i32
    %c0_i32_0 = arith.constant 0 : i32
    return %arg0, %arg1, %c0_i32 : i32, i32, i32
  }
}

module attributes {stable_mosaic.version = 11 : i64} {
  func.func @_gemm_stats_kernel(%arg0: i32, %arg1: i32, %arg2: memref<1x128x64xbf16, #tpu.memory_space<vmem>>, %arg3: memref<1x64x128xbf16, #tpu.memory_space<vmem>>, %arg4: memref<1x128x128xf32, #tpu.memory_space<vmem>>, %arg5: memref<1x128xf32, #tpu.memory_space<vmem>>, %arg6: memref<1x128xf32, #tpu.memory_space<vmem>>) attributes {dimension_semantics = [#tpu.dimension_semantics<arbitrary>, #tpu.dimension_semantics<arbitrary>], iteration_bounds = array<i64: 1, 1>, scalar_prefetch = 0 : i64, scratch_operands = 0 : i64, tpu.core_type = #tpu.core_type<tc>, window_params = [{transform_indices = @transform_0, window_bounds = array<i64: 1, 128, 64>}, {transform_indices = @transform_1, window_bounds = array<i64: 1, 64, 128>}, {transform_indices = @transform_2, window_bounds = array<i64: 1, 128, 128>}, {pipeline_mode = #tpu.pipeline_mode<synchronous>, transform_indices = @transform_3, window_bounds = array<i64: 1, 128>}, {pipeline_mode = #tpu.pipeline_mode<synchronous>, transform_indices = @transform_4, window_bounds = array<i64: 1, 128>}]} {
    %c0_i32 = arith.constant 0 : i32
    %0 = arith.cmpi eq, %arg0, %c0_i32 : i32
    %c0_i32_0 = arith.constant 0 : i32
    %1 = arith.cmpi eq, %arg1, %c0_i32_0 : i32
    %2 = arith.andi %0, %1 : i1
    %3 = arith.extui %2 : i1 to i32
    %c0_i32_1 = arith.constant 0 : i32
    %4 = arith.cmpi ne, %3, %c0_i32_1 : i32
    scf.if %4 {
      %cst_20 = arith.constant 0.000000e+00 : f32
      %24 = vector.broadcast %cst_20 : f32 to vector<1x128xf32>
      %c0_21 = arith.constant 0 : index
      %c0_22 = arith.constant 0 : index
      %25 = vector.load %arg5[%c0_21, %c0_22] : memref<1x128xf32, #tpu.memory_space<vmem>>, vector<1x128xf32>
      tpu.vector_store %arg5[%c0_21, %c0_22], %24 {strides = array<i32>} : memref<1x128xf32, #tpu.memory_space<vmem>>, vector<1x128xf32>,
      %cst_23 = arith.constant 0.000000e+00 : f32
      %26 = vector.broadcast %cst_23 : f32 to vector<1x128xf32>
      %c0_24 = arith.constant 0 : index
      %c0_25 = arith.constant 0 : index
      %27 = vector.load %arg6[%c0_24, %c0_25] : memref<1x128xf32, #tpu.memory_space<vmem>>, vector<1x128xf32>
      tpu.vector_store %arg6[%c0_24, %c0_25], %26 {strides = array<i32>} : memref<1x128xf32, #tpu.memory_space<vmem>>, vector<1x128xf32>,
    } else {
    }
    %c0 = arith.constant 0 : index
    %c0_2 = arith.constant 0 : index
    %c0_3 = arith.constant 0 : index
    %5 = vector.load %arg2[%c0, %c0_2, %c0_3] : memref<1x128x64xbf16, #tpu.memory_space<vmem>>, vector<1x128x64xbf16>
    %6 = vector.shape_cast %5 : vector<1x128x64xbf16> to vector<128x64xbf16>
    %c0_4 = arith.constant 0 : index
    %c0_5 = arith.constant 0 : index
    %c0_6 = arith.constant 0 : index
    %7 = vector.load %arg3[%c0_4, %c0_5, %c0_6] : memref<1x64x128xbf16, #tpu.memory_space<vmem>>, vector<1x64x128xbf16>
    %8 = vector.shape_cast %7 : vector<1x64x128xbf16> to vector<64x128xbf16>
    %cst = arith.constant dense<0.000000e+00> : vector<128x128xf32>
    %9 = tpu.matmul %6, %8, %cst {dimension_numbers = #tpu.dot_dimension_numbers<[1], [0], [0], [1], [0, 0, 1, 1], [], []>} : vector<128x64xbf16>, vector<64x128xbf16>, vector<128x128xf32> -> vector<128x128xf32>
    %c0_7 = arith.constant 0 : index
    %c0_8 = arith.constant 0 : index
    %c0_9 = arith.constant 0 : index
    %10 = vector.load %arg4[%c0_7, %c0_8, %c0_9] : memref<1x128x128xf32, #tpu.memory_space<vmem>>, vector<1x128x128xf32>
    %11 = vector.shape_cast %10 : vector<1x128x128xf32> to vector<128x128xf32>
    %12 = vector.shape_cast %9 : vector<128x128xf32> to vector<1x128x128xf32>
    tpu.vector_store %arg4[%c0_7, %c0_8, %c0_9], %12 {strides = array<i32>} : memref<1x128x128xf32, #tpu.memory_space<vmem>>, vector<1x128x128xf32>,
    %c0_10 = arith.constant 0 : index
    %c0_11 = arith.constant 0 : index
    %13 = vector.load %arg5[%c0_10, %c0_11] : memref<1x128xf32, #tpu.memory_space<vmem>>, vector<1x128xf32>
    %cst_12 = arith.constant dense<0.000000e+00> : vector<128xf32>
    %14 = vector.multi_reduction <add>, %9, %cst_12 [0] : vector<128x128xf32> to vector<128xf32>
    %15 = vector.shape_cast %14 : vector<128xf32> to vector<1x128xf32>
    %16 = arith.addf %13, %15 : vector<1x128xf32>
    %c0_13 = arith.constant 0 : index
    %c0_14 = arith.constant 0 : index
    %17 = vector.load %arg5[%c0_13, %c0_14] : memref<1x128xf32, #tpu.memory_space<vmem>>, vector<1x128xf32>
    tpu.vector_store %arg5[%c0_13, %c0_14], %16 {strides = array<i32>} : memref<1x128xf32, #tpu.memory_space<vmem>>, vector<1x128xf32>,
    %c0_15 = arith.constant 0 : index
    %c0_16 = arith.constant 0 : index
    %18 = vector.load %arg6[%c0_15, %c0_16] : memref<1x128xf32, #tpu.memory_space<vmem>>, vector<1x128xf32>
    %19 = arith.mulf %9, %9 : vector<128x128xf32>
    %cst_17 = arith.constant dense<0.000000e+00> : vector<128xf32>
    %20 = vector.multi_reduction <add>, %19, %cst_17 [0] : vector<128x128xf32> to vector<128xf32>
    %21 = vector.shape_cast %20 : vector<128xf32> to vector<1x128xf32>
    %22 = arith.addf %18, %21 : vector<1x128xf32>
    %c0_18 = arith.constant 0 : index
    %c0_19 = arith.constant 0 : index
    %23 = vector.load %arg6[%c0_18, %c0_19] : memref<1x128xf32, #tpu.memory_space<vmem>>, vector<1x128xf32>
    tpu.vector_store %arg6[%c0_18, %c0_19], %22 {strides = array<i32>} : memref<1x128xf32, #tpu.memory_space<vmem>>, vector<1x128xf32>,
    return
  }
  func.func @transform_0(%arg0: i32, %arg1: i32) -> (i32, i32, i32) {
    %c0_i32 = arith.constant 0 : i32
    %c0_i32_0 = arith.constant 0 : i32
    return %arg0, %arg1, %c0_i32 : i32, i32, i32
  }
  func.func @transform_1(%arg0: i32, %arg1: i32) -> (i32, i32, i32) {
    %c0_i32 = arith.constant 0 : i32
    %c0_i32_0 = arith.constant 0 : i32
    %c0_i32_1 = arith.constant 0 : i32
    return %arg0, %c0_i32, %c0_i32_0 : i32, i32, i32
  }
  func.func @transform_2(%arg0: i32, %arg1: i32) -> (i32, i32, i32) {
    %c0_i32 = arith.constant 0 : i32
    %c0_i32_0 = arith.constant 0 : i32
    return %arg0, %arg1, %c0_i32 : i32, i32, i32
  }
  func.func @transform_3(%arg0: i32, %arg1: i32) -> (i32, i32) {
    %c0_i32 = arith.constant 0 : i32
    %c0_i32_0 = arith.constant 0 : i32
    %c0_i32_1 = arith.constant 0 : i32
    return %c0_i32, %c0_i32_0 : i32, i32
  }
  func.func @transform_4(%arg0: i32, %arg1: i32) -> (i32, i32) {
    %c0_i32 = arith.constant 0 : i32
    %c0_i32_0 = arith.constant 0 : i32
    %c0_i32_1 = arith.constant 0 : i32
    return %c0_i32, %c0_i32_0 : i32, i32
  }
}

module attributes {stable_mosaic.version = 11 : i64} {
  func.func @_gemm_stats_kernel(%arg0: i32, %arg1: i32, %arg2: memref<1x32x128xbf16, #tpu.memory_space<vmem>>, %arg3: memref<1x128x128xbf16, #tpu.memory_space<vmem>>, %arg4: memref<1x32x128xf32, #tpu.memory_space<vmem>>, %arg5: memref<1x128xf32, #tpu.memory_space<vmem>>, %arg6: memref<1x128xf32, #tpu.memory_space<vmem>>) attributes {dimension_semantics = [#tpu.dimension_semantics<arbitrary>, #tpu.dimension_semantics<arbitrary>], iteration_bounds = array<i64: 1, 1>, scalar_prefetch = 0 : i64, scratch_operands = 0 : i64, tpu.core_type = #tpu.core_type<tc>, window_params = [{transform_indices = @transform_0, window_bounds = array<i64: 1, 32, 128>}, {transform_indices = @transform_1, window_bounds = array<i64: 1, 128, 128>}, {transform_indices = @transform_2, window_bounds = array<i64: 1, 32, 128>}, {pipeline_mode = #tpu.pipeline_mode<synchronous>, transform_indices = @transform_3, window_bounds = array<i64: 1, 128>}, {pipeline_mode = #tpu.pipeline_mode<synchronous>, transform_indices = @transform_4, window_bounds = array<i64: 1, 128>}]} {
    %c0_i32 = arith.constant 0 : i32
    %0 = arith.cmpi eq, %arg0, %c0_i32 : i32
    %c0_i32_0 = arith.constant 0 : i32
    %1 = arith.cmpi eq, %arg1, %c0_i32_0 : i32
    %2 = arith.andi %0, %1 : i1
    %3 = arith.extui %2 : i1 to i32
    %c0_i32_1 = arith.constant 0 : i32
    %4 = arith.cmpi ne, %3, %c0_i32_1 : i32
    scf.if %4 {
      %cst_20 = arith.constant 0.000000e+00 : f32
      %24 = vector.broadcast %cst_20 : f32 to vector<1x128xf32>
      %c0_21 = arith.constant 0 : index
      %c0_22 = arith.constant 0 : index
      %25 = vector.load %arg5[%c0_21, %c0_22] : memref<1x128xf32, #tpu.memory_space<vmem>>, vector<1x128xf32>
      tpu.vector_store %arg5[%c0_21, %c0_22], %24 {strides = array<i32>} : memref<1x128xf32, #tpu.memory_space<vmem>>, vector<1x128xf32>,
      %cst_23 = arith.constant 0.000000e+00 : f32
      %26 = vector.broadcast %cst_23 : f32 to vector<1x128xf32>
      %c0_24 = arith.constant 0 : index
      %c0_25 = arith.constant 0 : index
      %27 = vector.load %arg6[%c0_24, %c0_25] : memref<1x128xf32, #tpu.memory_space<vmem>>, vector<1x128xf32>
      tpu.vector_store %arg6[%c0_24, %c0_25], %26 {strides = array<i32>} : memref<1x128xf32, #tpu.memory_space<vmem>>, vector<1x128xf32>,
    } else {
    }
    %c0 = arith.constant 0 : index
    %c0_2 = arith.constant 0 : index
    %c0_3 = arith.constant 0 : index
    %5 = vector.load %arg2[%c0, %c0_2, %c0_3] : memref<1x32x128xbf16, #tpu.memory_space<vmem>>, vector<1x32x128xbf16>
    %6 = vector.shape_cast %5 : vector<1x32x128xbf16> to vector<32x128xbf16>
    %c0_4 = arith.constant 0 : index
    %c0_5 = arith.constant 0 : index
    %c0_6 = arith.constant 0 : index
    %7 = vector.load %arg3[%c0_4, %c0_5, %c0_6] : memref<1x128x128xbf16, #tpu.memory_space<vmem>>, vector<1x128x128xbf16>
    %8 = vector.shape_cast %7 : vector<1x128x128xbf16> to vector<128x128xbf16>
    %cst = arith.constant dense<0.000000e+00> : vector<32x128xf32>
    %9 = tpu.matmul %6, %8, %cst {dimension_numbers = #tpu.dot_dimension_numbers<[1], [0], [0], [1], [0, 0, 1, 1], [], []>} : vector<32x128xbf16>, vector<128x128xbf16>, vector<32x128xf32> -> vector<32x128xf32>
    %c0_7 = arith.constant 0 : index
    %c0_8 = arith.constant 0 : index
    %c0_9 = arith.constant 0 : index
    %10 = vector.load %arg4[%c0_7, %c0_8, %c0_9] : memref<1x32x128xf32, #tpu.memory_space<vmem>>, vector<1x32x128xf32>
    %11 = vector.shape_cast %10 : vector<1x32x128xf32> to vector<32x128xf32>
    %12 = vector.shape_cast %9 : vector<32x128xf32> to vector<1x32x128xf32>
    tpu.vector_store %arg4[%c0_7, %c0_8, %c0_9], %12 {strides = array<i32>} : memref<1x32x128xf32, #tpu.memory_space<vmem>>, vector<1x32x128xf32>,
    %c0_10 = arith.constant 0 : index
    %c0_11 = arith.constant 0 : index
    %13 = vector.load %arg5[%c0_10, %c0_11] : memref<1x128xf32, #tpu.memory_space<vmem>>, vector<1x128xf32>
    %cst_12 = arith.constant dense<0.000000e+00> : vector<128xf32>
    %14 = vector.multi_reduction <add>, %9, %cst_12 [0] : vector<32x128xf32> to vector<128xf32>
    %15 = vector.shape_cast %14 : vector<128xf32> to vector<1x128xf32>
    %16 = arith.addf %13, %15 : vector<1x128xf32>
    %c0_13 = arith.constant 0 : index
    %c0_14 = arith.constant 0 : index
    %17 = vector.load %arg5[%c0_13, %c0_14] : memref<1x128xf32, #tpu.memory_space<vmem>>, vector<1x128xf32>
    tpu.vector_store %arg5[%c0_13, %c0_14], %16 {strides = array<i32>} : memref<1x128xf32, #tpu.memory_space<vmem>>, vector<1x128xf32>,
    %c0_15 = arith.constant 0 : index
    %c0_16 = arith.constant 0 : index
    %18 = vector.load %arg6[%c0_15, %c0_16] : memref<1x128xf32, #tpu.memory_space<vmem>>, vector<1x128xf32>
    %19 = arith.mulf %9, %9 : vector<32x128xf32>
    %cst_17 = arith.constant dense<0.000000e+00> : vector<128xf32>
    %20 = vector.multi_reduction <add>, %19, %cst_17 [0] : vector<32x128xf32> to vector<128xf32>
    %21 = vector.shape_cast %20 : vector<128xf32> to vector<1x128xf32>
    %22 = arith.addf %18, %21 : vector<1x128xf32>
    %c0_18 = arith.constant 0 : index
    %c0_19 = arith.constant 0 : index
    %23 = vector.load %arg6[%c0_18, %c0_19] : memref<1x128xf32, #tpu.memory_space<vmem>>, vector<1x128xf32>
    tpu.vector_store %arg6[%c0_18, %c0_19], %22 {strides = array<i32>} : memref<1x128xf32, #tpu.memory_space<vmem>>, vector<1x128xf32>,
    return
  }
  func.func @transform_0(%arg0: i32, %arg1: i32) -> (i32, i32, i32) {
    %c0_i32 = arith.constant 0 : i32
    %c0_i32_0 = arith.constant 0 : i32
    return %arg0, %arg1, %c0_i32 : i32, i32, i32
  }
  func.func @transform_1(%arg0: i32, %arg1: i32) -> (i32, i32, i32) {
    %c0_i32 = arith.constant 0 : i32
    %c0_i32_0 = arith.constant 0 : i32
    %c0_i32_1 = arith.constant 0 : i32
    return %arg0, %c0_i32, %c0_i32_0 : i32, i32, i32
  }
  func.func @transform_2(%arg0: i32, %arg1: i32) -> (i32, i32, i32) {
    %c0_i32 = arith.constant 0 : i32
    %c0_i32_0 = arith.constant 0 : i32
    return %arg0, %arg1, %c0_i32 : i32, i32, i32
  }
  func.func @transform_3(%arg0: i32, %arg1: i32) -> (i32, i32) {
    %c0_i32 = arith.constant 0 : i32
    %c0_i32_0 = arith.constant 0 : i32
    %c0_i32_1 = arith.constant 0 : i32
    return %c0_i32, %c0_i32_0 : i32, i32
  }
  func.func @transform_4(%arg0: i32, %arg1: i32) -> (i32, i32) {
    %c0_i32 = arith.constant 0 : i32
    %c0_i32_0 = arith.constant 0 : i32
    %c0_i32_1 = arith.constant 0 : i32
    return %c0_i32, %c0_i32_0 : i32, i32
  }
}

module attributes {stable_mosaic.version = 11 : i64} {
  func.func @_bn_prelu_kernel(%arg0: i32, %arg1: i32, %arg2: memref<1xf32, #tpu.memory_space<smem>>, %arg3: memref<1x128xf32, #tpu.memory_space<vmem>>, %arg4: memref<1x128xf32, #tpu.memory_space<vmem>>, %arg5: memref<1x32x128xf32, #tpu.memory_space<vmem>>, %arg6: memref<1x32x128xf32, #tpu.memory_space<vmem>>) attributes {dimension_semantics = [#tpu.dimension_semantics<parallel>, #tpu.dimension_semantics<parallel>], iteration_bounds = array<i64: 1, 1>, scalar_prefetch = 0 : i64, scratch_operands = 0 : i64, tpu.core_type = #tpu.core_type<tc>, window_params = [{transform_indices = @transform_0, window_bounds = array<i64: 1>}, {pipeline_mode = #tpu.pipeline_mode<synchronous>, transform_indices = @transform_1, window_bounds = array<i64: 1, 128>}, {pipeline_mode = #tpu.pipeline_mode<synchronous>, transform_indices = @transform_2, window_bounds = array<i64: 1, 128>}, {transform_indices = @transform_3, window_bounds = array<i64: 1, 32, 128>}, {transform_indices = @transform_4, window_bounds = array<i64: 1, 32, 128>}]} {
    %c0 = arith.constant 0 : index
    %c0_0 = arith.constant 0 : index
    %c0_1 = arith.constant 0 : index
    %0 = vector.load %arg5[%c0, %c0_0, %c0_1] : memref<1x32x128xf32, #tpu.memory_space<vmem>>, vector<1x32x128xf32>
    %1 = vector.shape_cast %0 : vector<1x32x128xf32> to vector<32x128xf32>
    %c0_2 = arith.constant 0 : index
    %c0_3 = arith.constant 0 : index
    %2 = vector.load %arg3[%c0_2, %c0_3] : memref<1x128xf32, #tpu.memory_space<vmem>>, vector<1x128xf32>
    %3 = vector.broadcast %2 : vector<1x128xf32> to vector<32x128xf32>
    %4 = arith.mulf %1, %3 : vector<32x128xf32>
    %c0_4 = arith.constant 0 : index
    %c0_5 = arith.constant 0 : index
    %5 = vector.load %arg4[%c0_4, %c0_5] : memref<1x128xf32, #tpu.memory_space<vmem>>, vector<1x128xf32>
    %6 = vector.broadcast %5 : vector<1x128xf32> to vector<32x128xf32>
    %7 = arith.addf %4, %6 : vector<32x128xf32>
    %c0_6 = arith.constant 0 : index
    %8 = memref.load %arg2[%c0_6] : memref<1xf32, #tpu.memory_space<smem>>
    %cst = arith.constant 0.000000e+00 : f32
    %9 = vector.broadcast %cst : f32 to vector<32x128xf32>
    %10 = arith.cmpf oge, %7, %9 : vector<32x128xf32>
    %11 = vector.broadcast %8 : f32 to vector<32x128xf32>
    %12 = arith.mulf %11, %7 : vector<32x128xf32>
    %13 = arith.select %10, %7, %12 : vector<32x128xi1>, vector<32x128xf32>
    %c0_7 = arith.constant 0 : index
    %c0_8 = arith.constant 0 : index
    %c0_9 = arith.constant 0 : index
    %14 = vector.load %arg6[%c0_7, %c0_8, %c0_9] : memref<1x32x128xf32, #tpu.memory_space<vmem>>, vector<1x32x128xf32>
    %15 = vector.shape_cast %14 : vector<1x32x128xf32> to vector<32x128xf32>
    %16 = vector.shape_cast %13 : vector<32x128xf32> to vector<1x32x128xf32>
    tpu.vector_store %arg6[%c0_7, %c0_8, %c0_9], %16 {strides = array<i32>} : memref<1x32x128xf32, #tpu.memory_space<vmem>>, vector<1x32x128xf32>,
    return
  }
  func.func @transform_0(%arg0: i32, %arg1: i32) -> i32 {
    %c0_i32 = arith.constant 0 : i32
    %c0_i32_0 = arith.constant 0 : i32
    return %c0_i32 : i32
  }
  func.func @transform_1(%arg0: i32, %arg1: i32) -> (i32, i32) {
    %c0_i32 = arith.constant 0 : i32
    %c0_i32_0 = arith.constant 0 : i32
    %c0_i32_1 = arith.constant 0 : i32
    return %c0_i32, %c0_i32_0 : i32, i32
  }
  func.func @transform_2(%arg0: i32, %arg1: i32) -> (i32, i32) {
    %c0_i32 = arith.constant 0 : i32
    %c0_i32_0 = arith.constant 0 : i32
    %c0_i32_1 = arith.constant 0 : i32
    return %c0_i32, %c0_i32_0 : i32, i32
  }
  func.func @transform_3(%arg0: i32, %arg1: i32) -> (i32, i32, i32) {
    %c0_i32 = arith.constant 0 : i32
    %c0_i32_0 = arith.constant 0 : i32
    return %arg0, %arg1, %c0_i32 : i32, i32, i32
  }
  func.func @transform_4(%arg0: i32, %arg1: i32) -> (i32, i32, i32) {
    %c0_i32 = arith.constant 0 : i32
    %c0_i32_0 = arith.constant 0 : i32
    return %arg0, %arg1, %c0_i32 : i32, i32, i32
  }
}

module attributes {stable_mosaic.version = 11 : i64} {
  func.func @_bn_prelu_res_kernel(%arg0: i32, %arg1: i32, %arg2: memref<1xf32, #tpu.memory_space<smem>>, %arg3: memref<1x128xf32, #tpu.memory_space<vmem>>, %arg4: memref<1x128xf32, #tpu.memory_space<vmem>>, %arg5: memref<1x32x128xf32, #tpu.memory_space<vmem>>, %arg6: memref<1x32x128xf32, #tpu.memory_space<vmem>>, %arg7: memref<1x32x128xf32, #tpu.memory_space<vmem>>) attributes {dimension_semantics = [#tpu.dimension_semantics<parallel>, #tpu.dimension_semantics<parallel>], iteration_bounds = array<i64: 4, 1>, scalar_prefetch = 0 : i64, scratch_operands = 0 : i64, tpu.core_type = #tpu.core_type<tc>, window_params = [{transform_indices = @transform_0, window_bounds = array<i64: 1>}, {pipeline_mode = #tpu.pipeline_mode<synchronous>, transform_indices = @transform_1, window_bounds = array<i64: 1, 128>}, {pipeline_mode = #tpu.pipeline_mode<synchronous>, transform_indices = @transform_2, window_bounds = array<i64: 1, 128>}, {transform_indices = @transform_3, window_bounds = array<i64: 1, 32, 128>}, {transform_indices = @transform_4, window_bounds = array<i64: 1, 32, 128>}, {transform_indices = @transform_5, window_bounds = array<i64: 1, 32, 128>}]} {
    %c0 = arith.constant 0 : index
    %c0_0 = arith.constant 0 : index
    %c0_1 = arith.constant 0 : index
    %0 = vector.load %arg5[%c0, %c0_0, %c0_1] : memref<1x32x128xf32, #tpu.memory_space<vmem>>, vector<1x32x128xf32>
    %1 = vector.shape_cast %0 : vector<1x32x128xf32> to vector<32x128xf32>
    %c0_2 = arith.constant 0 : index
    %c0_3 = arith.constant 0 : index
    %2 = vector.load %arg3[%c0_2, %c0_3] : memref<1x128xf32, #tpu.memory_space<vmem>>, vector<1x128xf32>
    %3 = vector.broadcast %2 : vector<1x128xf32> to vector<32x128xf32>
    %4 = arith.mulf %1, %3 : vector<32x128xf32>
    %c0_4 = arith.constant 0 : index
    %c0_5 = arith.constant 0 : index
    %5 = vector.load %arg4[%c0_4, %c0_5] : memref<1x128xf32, #tpu.memory_space<vmem>>, vector<1x128xf32>
    %6 = vector.broadcast %5 : vector<1x128xf32> to vector<32x128xf32>
    %7 = arith.addf %4, %6 : vector<32x128xf32>
    %c0_6 = arith.constant 0 : index
    %8 = memref.load %arg2[%c0_6] : memref<1xf32, #tpu.memory_space<smem>>
    %cst = arith.constant 0.000000e+00 : f32
    %9 = vector.broadcast %cst : f32 to vector<32x128xf32>
    %10 = arith.cmpf oge, %7, %9 : vector<32x128xf32>
    %11 = vector.broadcast %8 : f32 to vector<32x128xf32>
    %12 = arith.mulf %11, %7 : vector<32x128xf32>
    %13 = arith.select %10, %7, %12 : vector<32x128xi1>, vector<32x128xf32>
    %c0_7 = arith.constant 0 : index
    %c0_8 = arith.constant 0 : index
    %c0_9 = arith.constant 0 : index
    %14 = vector.load %arg6[%c0_7, %c0_8, %c0_9] : memref<1x32x128xf32, #tpu.memory_space<vmem>>, vector<1x32x128xf32>
    %15 = vector.shape_cast %14 : vector<1x32x128xf32> to vector<32x128xf32>
    %16 = arith.addf %13, %15 : vector<32x128xf32>
    %c0_10 = arith.constant 0 : index
    %c0_11 = arith.constant 0 : index
    %c0_12 = arith.constant 0 : index
    %17 = vector.load %arg7[%c0_10, %c0_11, %c0_12] : memref<1x32x128xf32, #tpu.memory_space<vmem>>, vector<1x32x128xf32>
    %18 = vector.shape_cast %17 : vector<1x32x128xf32> to vector<32x128xf32>
    %19 = vector.shape_cast %16 : vector<32x128xf32> to vector<1x32x128xf32>
    tpu.vector_store %arg7[%c0_10, %c0_11, %c0_12], %19 {strides = array<i32>} : memref<1x32x128xf32, #tpu.memory_space<vmem>>, vector<1x32x128xf32>,
    return
  }
  func.func @transform_0(%arg0: i32, %arg1: i32) -> i32 {
    %c0_i32 = arith.constant 0 : i32
    %c0_i32_0 = arith.constant 0 : i32
    return %c0_i32 : i32
  }
  func.func @transform_1(%arg0: i32, %arg1: i32) -> (i32, i32) {
    %c0_i32 = arith.constant 0 : i32
    %c0_i32_0 = arith.constant 0 : i32
    %c0_i32_1 = arith.constant 0 : i32
    return %c0_i32, %c0_i32_0 : i32, i32
  }
  func.func @transform_2(%arg0: i32, %arg1: i32) -> (i32, i32) {
    %c0_i32 = arith.constant 0 : i32
    %c0_i32_0 = arith.constant 0 : i32
    %c0_i32_1 = arith.constant 0 : i32
    return %c0_i32, %c0_i32_0 : i32, i32
  }
  func.func @transform_3(%arg0: i32, %arg1: i32) -> (i32, i32, i32) {
    %c0_i32 = arith.constant 0 : i32
    %c0_i32_0 = arith.constant 0 : i32
    return %arg0, %arg1, %c0_i32 : i32, i32, i32
  }
  func.func @transform_4(%arg0: i32, %arg1: i32) -> (i32, i32, i32) {
    %c0_i32 = arith.constant 0 : i32
    %c0_i32_0 = arith.constant 0 : i32
    return %arg0, %arg1, %c0_i32 : i32, i32, i32
  }
  func.func @transform_5(%arg0: i32, %arg1: i32) -> (i32, i32, i32) {
    %c0_i32 = arith.constant 0 : i32
    %c0_i32_0 = arith.constant 0 : i32
    return %arg0, %arg1, %c0_i32 : i32, i32, i32
  }
}

module attributes {stable_mosaic.version = 11 : i64} {
  func.func @_gemm_stats_kernel(%arg0: i32, %arg1: i32, %arg2: memref<1x32x64xbf16, #tpu.memory_space<vmem>>, %arg3: memref<1x64x128xbf16, #tpu.memory_space<vmem>>, %arg4: memref<1x32x128xf32, #tpu.memory_space<vmem>>, %arg5: memref<1x128xf32, #tpu.memory_space<vmem>>, %arg6: memref<1x128xf32, #tpu.memory_space<vmem>>) attributes {dimension_semantics = [#tpu.dimension_semantics<arbitrary>, #tpu.dimension_semantics<arbitrary>], iteration_bounds = array<i64: 4, 1>, scalar_prefetch = 0 : i64, scratch_operands = 0 : i64, tpu.core_type = #tpu.core_type<tc>, window_params = [{transform_indices = @transform_0, window_bounds = array<i64: 1, 32, 64>}, {transform_indices = @transform_1, window_bounds = array<i64: 1, 64, 128>}, {transform_indices = @transform_2, window_bounds = array<i64: 1, 32, 128>}, {pipeline_mode = #tpu.pipeline_mode<synchronous>, transform_indices = @transform_3, window_bounds = array<i64: 1, 128>}, {pipeline_mode = #tpu.pipeline_mode<synchronous>, transform_indices = @transform_4, window_bounds = array<i64: 1, 128>}]} {
    %c0_i32 = arith.constant 0 : i32
    %0 = arith.cmpi eq, %arg0, %c0_i32 : i32
    %c0_i32_0 = arith.constant 0 : i32
    %1 = arith.cmpi eq, %arg1, %c0_i32_0 : i32
    %2 = arith.andi %0, %1 : i1
    %3 = arith.extui %2 : i1 to i32
    %c0_i32_1 = arith.constant 0 : i32
    %4 = arith.cmpi ne, %3, %c0_i32_1 : i32
    scf.if %4 {
      %cst_20 = arith.constant 0.000000e+00 : f32
      %24 = vector.broadcast %cst_20 : f32 to vector<1x128xf32>
      %c0_21 = arith.constant 0 : index
      %c0_22 = arith.constant 0 : index
      %25 = vector.load %arg5[%c0_21, %c0_22] : memref<1x128xf32, #tpu.memory_space<vmem>>, vector<1x128xf32>
      tpu.vector_store %arg5[%c0_21, %c0_22], %24 {strides = array<i32>} : memref<1x128xf32, #tpu.memory_space<vmem>>, vector<1x128xf32>,
      %cst_23 = arith.constant 0.000000e+00 : f32
      %26 = vector.broadcast %cst_23 : f32 to vector<1x128xf32>
      %c0_24 = arith.constant 0 : index
      %c0_25 = arith.constant 0 : index
      %27 = vector.load %arg6[%c0_24, %c0_25] : memref<1x128xf32, #tpu.memory_space<vmem>>, vector<1x128xf32>
      tpu.vector_store %arg6[%c0_24, %c0_25], %26 {strides = array<i32>} : memref<1x128xf32, #tpu.memory_space<vmem>>, vector<1x128xf32>,
    } else {
    }
    %c0 = arith.constant 0 : index
    %c0_2 = arith.constant 0 : index
    %c0_3 = arith.constant 0 : index
    %5 = vector.load %arg2[%c0, %c0_2, %c0_3] : memref<1x32x64xbf16, #tpu.memory_space<vmem>>, vector<1x32x64xbf16>
    %6 = vector.shape_cast %5 : vector<1x32x64xbf16> to vector<32x64xbf16>
    %c0_4 = arith.constant 0 : index
    %c0_5 = arith.constant 0 : index
    %c0_6 = arith.constant 0 : index
    %7 = vector.load %arg3[%c0_4, %c0_5, %c0_6] : memref<1x64x128xbf16, #tpu.memory_space<vmem>>, vector<1x64x128xbf16>
    %8 = vector.shape_cast %7 : vector<1x64x128xbf16> to vector<64x128xbf16>
    %cst = arith.constant dense<0.000000e+00> : vector<32x128xf32>
    %9 = tpu.matmul %6, %8, %cst {dimension_numbers = #tpu.dot_dimension_numbers<[1], [0], [0], [1], [0, 0, 1, 1], [], []>} : vector<32x64xbf16>, vector<64x128xbf16>, vector<32x128xf32> -> vector<32x128xf32>
    %c0_7 = arith.constant 0 : index
    %c0_8 = arith.constant 0 : index
    %c0_9 = arith.constant 0 : index
    %10 = vector.load %arg4[%c0_7, %c0_8, %c0_9] : memref<1x32x128xf32, #tpu.memory_space<vmem>>, vector<1x32x128xf32>
    %11 = vector.shape_cast %10 : vector<1x32x128xf32> to vector<32x128xf32>
    %12 = vector.shape_cast %9 : vector<32x128xf32> to vector<1x32x128xf32>
    tpu.vector_store %arg4[%c0_7, %c0_8, %c0_9], %12 {strides = array<i32>} : memref<1x32x128xf32, #tpu.memory_space<vmem>>, vector<1x32x128xf32>,
    %c0_10 = arith.constant 0 : index
    %c0_11 = arith.constant 0 : index
    %13 = vector.load %arg5[%c0_10, %c0_11] : memref<1x128xf32, #tpu.memory_space<vmem>>, vector<1x128xf32>
    %cst_12 = arith.constant dense<0.000000e+00> : vector<128xf32>
    %14 = vector.multi_reduction <add>, %9, %cst_12 [0] : vector<32x128xf32> to vector<128xf32>
    %15 = vector.shape_cast %14 : vector<128xf32> to vector<1x128xf32>
    %16 = arith.addf %13, %15 : vector<1x128xf32>
    %c0_13 = arith.constant 0 : index
    %c0_14 = arith.constant 0 : index
    %17 = vector.load %arg5[%c0_13, %c0_14] : memref<1x128xf32, #tpu.memory_space<vmem>>, vector<1x128xf32>
    tpu.vector_store %arg5[%c0_13, %c0_14], %16 {strides = array<i32>} : memref<1x128xf32, #tpu.memory_space<vmem>>, vector<1x128xf32>,
    %c0_15 = arith.constant 0 : index
    %c0_16 = arith.constant 0 : index
    %18 = vector.load %arg6[%c0_15, %c0_16] : memref<1x128xf32, #tpu.memory_space<vmem>>, vector<1x128xf32>
    %19 = arith.mulf %9, %9 : vector<32x128xf32>
    %cst_17 = arith.constant dense<0.000000e+00> : vector<128xf32>
    %20 = vector.multi_reduction <add>, %19, %cst_17 [0] : vector<32x128xf32> to vector<128xf32>
    %21 = vector.shape_cast %20 : vector<128xf32> to vector<1x128xf32>
    %22 = arith.addf %18, %21 : vector<1x128xf32>
    %c0_18 = arith.constant 0 : index
    %c0_19 = arith.constant 0 : index
    %23 = vector.load %arg6[%c0_18, %c0_19] : memref<1x128xf32, #tpu.memory_space<vmem>>, vector<1x128xf32>
    tpu.vector_store %arg6[%c0_18, %c0_19], %22 {strides = array<i32>} : memref<1x128xf32, #tpu.memory_space<vmem>>, vector<1x128xf32>,
    return
  }
  func.func @transform_0(%arg0: i32, %arg1: i32) -> (i32, i32, i32) {
    %c0_i32 = arith.constant 0 : i32
    %c0_i32_0 = arith.constant 0 : i32
    return %arg0, %arg1, %c0_i32 : i32, i32, i32
  }
  func.func @transform_1(%arg0: i32, %arg1: i32) -> (i32, i32, i32) {
    %c0_i32 = arith.constant 0 : i32
    %c0_i32_0 = arith.constant 0 : i32
    %c0_i32_1 = arith.constant 0 : i32
    return %arg0, %c0_i32, %c0_i32_0 : i32, i32, i32
  }
  func.func @transform_2(%arg0: i32, %arg1: i32) -> (i32, i32, i32) {
    %c0_i32 = arith.constant 0 : i32
    %c0_i32_0 = arith.constant 0 : i32
    return %arg0, %arg1, %c0_i32 : i32, i32, i32
  }
  func.func @transform_3(%arg0: i32, %arg1: i32) -> (i32, i32) {
    %c0_i32 = arith.constant 0 : i32
    %c0_i32_0 = arith.constant 0 : i32
    %c0_i32_1 = arith.constant 0 : i32
    return %c0_i32, %c0_i32_0 : i32, i32
  }
  func.func @transform_4(%arg0: i32, %arg1: i32) -> (i32, i32) {
    %c0_i32 = arith.constant 0 : i32
    %c0_i32_0 = arith.constant 0 : i32
    %c0_i32_1 = arith.constant 0 : i32
    return %c0_i32, %c0_i32_0 : i32, i32
  }
}

module attributes {stable_mosaic.version = 11 : i64} {
  func.func @_gemm_stats_kernel(%arg0: i32, %arg1: i32, %arg2: memref<1x128x32xbf16, #tpu.memory_space<vmem>>, %arg3: memref<1x32x128xbf16, #tpu.memory_space<vmem>>, %arg4: memref<1x128x128xf32, #tpu.memory_space<vmem>>, %arg5: memref<1x128xf32, #tpu.memory_space<vmem>>, %arg6: memref<1x128xf32, #tpu.memory_space<vmem>>) attributes {dimension_semantics = [#tpu.dimension_semantics<arbitrary>, #tpu.dimension_semantics<arbitrary>], iteration_bounds = array<i64: 4, 1>, scalar_prefetch = 0 : i64, scratch_operands = 0 : i64, tpu.core_type = #tpu.core_type<tc>, window_params = [{transform_indices = @transform_0, window_bounds = array<i64: 1, 128, 32>}, {transform_indices = @transform_1, window_bounds = array<i64: 1, 32, 128>}, {transform_indices = @transform_2, window_bounds = array<i64: 1, 128, 128>}, {pipeline_mode = #tpu.pipeline_mode<synchronous>, transform_indices = @transform_3, window_bounds = array<i64: 1, 128>}, {pipeline_mode = #tpu.pipeline_mode<synchronous>, transform_indices = @transform_4, window_bounds = array<i64: 1, 128>}]} {
    %c0_i32 = arith.constant 0 : i32
    %0 = arith.cmpi eq, %arg0, %c0_i32 : i32
    %c0_i32_0 = arith.constant 0 : i32
    %1 = arith.cmpi eq, %arg1, %c0_i32_0 : i32
    %2 = arith.andi %0, %1 : i1
    %3 = arith.extui %2 : i1 to i32
    %c0_i32_1 = arith.constant 0 : i32
    %4 = arith.cmpi ne, %3, %c0_i32_1 : i32
    scf.if %4 {
      %cst_20 = arith.constant 0.000000e+00 : f32
      %24 = vector.broadcast %cst_20 : f32 to vector<1x128xf32>
      %c0_21 = arith.constant 0 : index
      %c0_22 = arith.constant 0 : index
      %25 = vector.load %arg5[%c0_21, %c0_22] : memref<1x128xf32, #tpu.memory_space<vmem>>, vector<1x128xf32>
      tpu.vector_store %arg5[%c0_21, %c0_22], %24 {strides = array<i32>} : memref<1x128xf32, #tpu.memory_space<vmem>>, vector<1x128xf32>,
      %cst_23 = arith.constant 0.000000e+00 : f32
      %26 = vector.broadcast %cst_23 : f32 to vector<1x128xf32>
      %c0_24 = arith.constant 0 : index
      %c0_25 = arith.constant 0 : index
      %27 = vector.load %arg6[%c0_24, %c0_25] : memref<1x128xf32, #tpu.memory_space<vmem>>, vector<1x128xf32>
      tpu.vector_store %arg6[%c0_24, %c0_25], %26 {strides = array<i32>} : memref<1x128xf32, #tpu.memory_space<vmem>>, vector<1x128xf32>,
    } else {
    }
    %c0 = arith.constant 0 : index
    %c0_2 = arith.constant 0 : index
    %c0_3 = arith.constant 0 : index
    %5 = vector.load %arg2[%c0, %c0_2, %c0_3] : memref<1x128x32xbf16, #tpu.memory_space<vmem>>, vector<1x128x32xbf16>
    %6 = vector.shape_cast %5 : vector<1x128x32xbf16> to vector<128x32xbf16>
    %c0_4 = arith.constant 0 : index
    %c0_5 = arith.constant 0 : index
    %c0_6 = arith.constant 0 : index
    %7 = vector.load %arg3[%c0_4, %c0_5, %c0_6] : memref<1x32x128xbf16, #tpu.memory_space<vmem>>, vector<1x32x128xbf16>
    %8 = vector.shape_cast %7 : vector<1x32x128xbf16> to vector<32x128xbf16>
    %cst = arith.constant dense<0.000000e+00> : vector<128x128xf32>
    %9 = tpu.matmul %6, %8, %cst {dimension_numbers = #tpu.dot_dimension_numbers<[1], [0], [0], [1], [0, 0, 1, 1], [], []>} : vector<128x32xbf16>, vector<32x128xbf16>, vector<128x128xf32> -> vector<128x128xf32>
    %c0_7 = arith.constant 0 : index
    %c0_8 = arith.constant 0 : index
    %c0_9 = arith.constant 0 : index
    %10 = vector.load %arg4[%c0_7, %c0_8, %c0_9] : memref<1x128x128xf32, #tpu.memory_space<vmem>>, vector<1x128x128xf32>
    %11 = vector.shape_cast %10 : vector<1x128x128xf32> to vector<128x128xf32>
    %12 = vector.shape_cast %9 : vector<128x128xf32> to vector<1x128x128xf32>
    tpu.vector_store %arg4[%c0_7, %c0_8, %c0_9], %12 {strides = array<i32>} : memref<1x128x128xf32, #tpu.memory_space<vmem>>, vector<1x128x128xf32>,
    %c0_10 = arith.constant 0 : index
    %c0_11 = arith.constant 0 : index
    %13 = vector.load %arg5[%c0_10, %c0_11] : memref<1x128xf32, #tpu.memory_space<vmem>>, vector<1x128xf32>
    %cst_12 = arith.constant dense<0.000000e+00> : vector<128xf32>
    %14 = vector.multi_reduction <add>, %9, %cst_12 [0] : vector<128x128xf32> to vector<128xf32>
    %15 = vector.shape_cast %14 : vector<128xf32> to vector<1x128xf32>
    %16 = arith.addf %13, %15 : vector<1x128xf32>
    %c0_13 = arith.constant 0 : index
    %c0_14 = arith.constant 0 : index
    %17 = vector.load %arg5[%c0_13, %c0_14] : memref<1x128xf32, #tpu.memory_space<vmem>>, vector<1x128xf32>
    tpu.vector_store %arg5[%c0_13, %c0_14], %16 {strides = array<i32>} : memref<1x128xf32, #tpu.memory_space<vmem>>, vector<1x128xf32>,
    %c0_15 = arith.constant 0 : index
    %c0_16 = arith.constant 0 : index
    %18 = vector.load %arg6[%c0_15, %c0_16] : memref<1x128xf32, #tpu.memory_space<vmem>>, vector<1x128xf32>
    %19 = arith.mulf %9, %9 : vector<128x128xf32>
    %cst_17 = arith.constant dense<0.000000e+00> : vector<128xf32>
    %20 = vector.multi_reduction <add>, %19, %cst_17 [0] : vector<128x128xf32> to vector<128xf32>
    %21 = vector.shape_cast %20 : vector<128xf32> to vector<1x128xf32>
    %22 = arith.addf %18, %21 : vector<1x128xf32>
    %c0_18 = arith.constant 0 : index
    %c0_19 = arith.constant 0 : index
    %23 = vector.load %arg6[%c0_18, %c0_19] : memref<1x128xf32, #tpu.memory_space<vmem>>, vector<1x128xf32>
    tpu.vector_store %arg6[%c0_18, %c0_19], %22 {strides = array<i32>} : memref<1x128xf32, #tpu.memory_space<vmem>>, vector<1x128xf32>,
    return
  }
  func.func @transform_0(%arg0: i32, %arg1: i32) -> (i32, i32, i32) {
    %c0_i32 = arith.constant 0 : i32
    %c0_i32_0 = arith.constant 0 : i32
    return %arg0, %arg1, %c0_i32 : i32, i32, i32
  }
  func.func @transform_1(%arg0: i32, %arg1: i32) -> (i32, i32, i32) {
    %c0_i32 = arith.constant 0 : i32
    %c0_i32_0 = arith.constant 0 : i32
    %c0_i32_1 = arith.constant 0 : i32
    return %arg0, %c0_i32, %c0_i32_0 : i32, i32, i32
  }
  func.func @transform_2(%arg0: i32, %arg1: i32) -> (i32, i32, i32) {
    %c0_i32 = arith.constant 0 : i32
    %c0_i32_0 = arith.constant 0 : i32
    return %arg0, %arg1, %c0_i32 : i32, i32, i32
  }
  func.func @transform_3(%arg0: i32, %arg1: i32) -> (i32, i32) {
    %c0_i32 = arith.constant 0 : i32
    %c0_i32_0 = arith.constant 0 : i32
    %c0_i32_1 = arith.constant 0 : i32
    return %c0_i32, %c0_i32_0 : i32, i32
  }
  func.func @transform_4(%arg0: i32, %arg1: i32) -> (i32, i32) {
    %c0_i32 = arith.constant 0 : i32
    %c0_i32_0 = arith.constant 0 : i32
    %c0_i32_1 = arith.constant 0 : i32
    return %c0_i32, %c0_i32_0 : i32, i32
  }
}

module attributes {stable_mosaic.version = 11 : i64} {
  func.func @_bn_prelu_res_kernel(%arg0: i32, %arg1: i32, %arg2: memref<1xf32, #tpu.memory_space<smem>>, %arg3: memref<1x128xf32, #tpu.memory_space<vmem>>, %arg4: memref<1x128xf32, #tpu.memory_space<vmem>>, %arg5: memref<1x128x128xf32, #tpu.memory_space<vmem>>, %arg6: memref<1x128x128xf32, #tpu.memory_space<vmem>>, %arg7: memref<1x128x128xf32, #tpu.memory_space<vmem>>) attributes {dimension_semantics = [#tpu.dimension_semantics<parallel>, #tpu.dimension_semantics<parallel>], iteration_bounds = array<i64: 4, 1>, scalar_prefetch = 0 : i64, scratch_operands = 0 : i64, tpu.core_type = #tpu.core_type<tc>, window_params = [{transform_indices = @transform_0, window_bounds = array<i64: 1>}, {pipeline_mode = #tpu.pipeline_mode<synchronous>, transform_indices = @transform_1, window_bounds = array<i64: 1, 128>}, {pipeline_mode = #tpu.pipeline_mode<synchronous>, transform_indices = @transform_2, window_bounds = array<i64: 1, 128>}, {transform_indices = @transform_3, window_bounds = array<i64: 1, 128, 128>}, {transform_indices = @transform_4, window_bounds = array<i64: 1, 128, 128>}, {transform_indices = @transform_5, window_bounds = array<i64: 1, 128, 128>}]} {
    %c0 = arith.constant 0 : index
    %c0_0 = arith.constant 0 : index
    %c0_1 = arith.constant 0 : index
    %0 = vector.load %arg5[%c0, %c0_0, %c0_1] : memref<1x128x128xf32, #tpu.memory_space<vmem>>, vector<1x128x128xf32>
    %1 = vector.shape_cast %0 : vector<1x128x128xf32> to vector<128x128xf32>
    %c0_2 = arith.constant 0 : index
    %c0_3 = arith.constant 0 : index
    %2 = vector.load %arg3[%c0_2, %c0_3] : memref<1x128xf32, #tpu.memory_space<vmem>>, vector<1x128xf32>
    %3 = vector.broadcast %2 : vector<1x128xf32> to vector<128x128xf32>
    %4 = arith.mulf %1, %3 : vector<128x128xf32>
    %c0_4 = arith.constant 0 : index
    %c0_5 = arith.constant 0 : index
    %5 = vector.load %arg4[%c0_4, %c0_5] : memref<1x128xf32, #tpu.memory_space<vmem>>, vector<1x128xf32>
    %6 = vector.broadcast %5 : vector<1x128xf32> to vector<128x128xf32>
    %7 = arith.addf %4, %6 : vector<128x128xf32>
    %c0_6 = arith.constant 0 : index
    %8 = memref.load %arg2[%c0_6] : memref<1xf32, #tpu.memory_space<smem>>
    %cst = arith.constant 0.000000e+00 : f32
    %9 = vector.broadcast %cst : f32 to vector<128x128xf32>
    %10 = arith.cmpf oge, %7, %9 : vector<128x128xf32>
    %11 = vector.broadcast %8 : f32 to vector<128x128xf32>
    %12 = arith.mulf %11, %7 : vector<128x128xf32>
    %13 = arith.select %10, %7, %12 : vector<128x128xi1>, vector<128x128xf32>
    %c0_7 = arith.constant 0 : index
    %c0_8 = arith.constant 0 : index
    %c0_9 = arith.constant 0 : index
    %14 = vector.load %arg6[%c0_7, %c0_8, %c0_9] : memref<1x128x128xf32, #tpu.memory_space<vmem>>, vector<1x128x128xf32>
    %15 = vector.shape_cast %14 : vector<1x128x128xf32> to vector<128x128xf32>
    %16 = arith.addf %13, %15 : vector<128x128xf32>
    %c0_10 = arith.constant 0 : index
    %c0_11 = arith.constant 0 : index
    %c0_12 = arith.constant 0 : index
    %17 = vector.load %arg7[%c0_10, %c0_11, %c0_12] : memref<1x128x128xf32, #tpu.memory_space<vmem>>, vector<1x128x128xf32>
    %18 = vector.shape_cast %17 : vector<1x128x128xf32> to vector<128x128xf32>
    %19 = vector.shape_cast %16 : vector<128x128xf32> to vector<1x128x128xf32>
    tpu.vector_store %arg7[%c0_10, %c0_11, %c0_12], %19 {strides = array<i32>} : memref<1x128x128xf32, #tpu.memory_space<vmem>>, vector<1x128x128xf32>,
    return
  }
  func.func @transform_0(%arg0: i32, %arg1: i32) -> i32 {
    %c0_i32 = arith.constant 0 : i32
    %c0_i32_0 = arith.constant 0 : i32
    return %c0_i32 : i32
  }
  func.func @transform_1(%arg0: i32, %arg1: i32) -> (i32, i32) {
    %c0_i32 = arith.constant 0 : i32
    %c0_i32_0 = arith.constant 0 : i32
    %c0_i32_1 = arith.constant 0 : i32
    return %c0_i32, %c0_i32_0 : i32, i32
  }
  func.func @transform_2(%arg0: i32, %arg1: i32) -> (i32, i32) {
    %c0_i32 = arith.constant 0 : i32
    %c0_i32_0 = arith.constant 0 : i32
    %c0_i32_1 = arith.constant 0 : i32
    return %c0_i32, %c0_i32_0 : i32, i32
  }
  func.func @transform_3(%arg0: i32, %arg1: i32) -> (i32, i32, i32) {
    %c0_i32 = arith.constant 0 : i32
    %c0_i32_0 = arith.constant 0 : i32
    return %arg0, %arg1, %c0_i32 : i32, i32, i32
  }
  func.func @transform_4(%arg0: i32, %arg1: i32) -> (i32, i32, i32) {
    %c0_i32 = arith.constant 0 : i32
    %c0_i32_0 = arith.constant 0 : i32
    return %arg0, %arg1, %c0_i32 : i32, i32, i32
  }
  func.func @transform_5(%arg0: i32, %arg1: i32) -> (i32, i32, i32) {
    %c0_i32 = arith.constant 0 : i32
    %c0_i32_0 = arith.constant 0 : i32
    return %arg0, %arg1, %c0_i32 : i32, i32, i32
  }
}

</mosaic_0001>

<bundles_post_ra>
// kernel: decoder_mdcblock1_forward.9
= control target key start
LH: loop header
LB: loop body
LE: loop exit
PB: predicated region body
PF: predicated region fallthrough
CT: control target
= control target key end

     0   :  { %s330_s1 = inlined_call_operand.vmem [shape: f32[1,128], index: 1, kind: input, shape index: {}]   ;;  %s331_s2 = inlined_call_operand.vmem [shape: f32[1,128], index: 2, kind: input, shape index: {}]   ;;  %s332_s3 = inlined_call_operand.vmem [shape: f32[1,128,128], index: 3, kind: input, shape index: {}]   ;;  %s333_s0 = inlined_call_operand.<no memory space> [shape: f32[1], index: 0, kind: input, shape index: {}]   ;;  %s334_s4 = inlined_call_operand.vmem [shape: f32[1,128,128], index: 4, kind: output, shape index: {}]  }
   0x1   :  { %v18_v0 = vld [vmem:[%s332_s3] sm:$0xff]  ;;  %v19_v3 = vld [vmem:[%s332_s3 + $0x8] sm:$0xff]  ;;  %v20_v6 = vld [vmem:[%s332_s3 + $0x10] sm:$0xff]  ;;  %v201_v9 = vstv %s333_s0 }
   0x2   :  { %v177_v1 = vld [vmem:[%s330_s1] ss:$0 sm:$0xff]  ;;  %v21_v7 = vld [vmem:[%s332_s3 + $0x18] sm:$0xff]  ;;  %v23_v13 = vld [vmem:[%s332_s3 + $0x28] sm:$0xff] }
   0x3   :  { %v182_v2 = vld [vmem:[%s331_s2] ss:$0 sm:$0xff]  ;;  %v38_v4 = vmul.f32 %v177_v1, %v18_v0  ;;  %v39_v5 = vmul.f32 %v177_v1, %v19_v3  ;;  %v40_v10 = vmul.f32 %v177_v1, %v20_v6  ;;  %v41_v11 = vmul.f32 %v177_v1, %v21_v7  ;;  %v24_v14 = vld [vmem:[%s332_s3 + $0x30] sm:$0xff]  ;;  %v25_v15 = vld [vmem:[%s332_s3 + $0x38] sm:$0xff] }
   0x4   :  { %v22_v8 = vld [vmem:[%s332_s3 + $0x20] sm:$0xff]  ;;  %v43_v18 = vmul.f32 %v177_v1, %v23_v13  ;;  %v44_v19 = vmul.f32 %v177_v1, %v24_v14  ;;  %v45_v23 = vmul.f32 %v177_v1, %v25_v15  ;;  %v27_v29 = vld [vmem:[%s332_s3 + $0x48] sm:$0xff]  ;;  %v28_v41 = vld [vmem:[%s332_s3 + $0x50] sm:$0xff] }
   0x5   :  { %v42_v12 = vmul.f32 %v177_v1, %v22_v8  ;;  %v58_v16 = vadd.f32 %v182_v2, %v38_v4  ;;  %v59_v17 = vadd.f32 %v182_v2, %v39_v5  ;;  %v60_v20 = vadd.f32 %v182_v2, %v40_v10  ;;  %v26_v28 = vld [vmem:[%s332_s3 + $0x40] sm:$0xff]  ;;  %v29_v42 = vld [vmem:[%s332_s3 + $0x58] sm:$0xff]  ;;  %v31_v53 = vld [vmem:[%s332_s3 + $0x68] sm:$0xff] }
   0x6   :  { %v61_v21 = vadd.f32 %v182_v2, %v41_v11  ;;  %v63_v35 = vadd.f32 %v182_v2, %v43_v18  ;;  %v64_v36 = vadd.f32 %v182_v2, %v44_v19  ;;  %v65_v38 = vadd.f32 %v182_v2, %v45_v23  ;;  %v30_v48 = vld [vmem:[%s332_s3 + $0x60] sm:$0xff]  ;;  %v32_v54 = vld [vmem:[%s332_s3 + $0x70] sm:$0xff]  ;;  %v33_v55 = vld [vmem:[%s332_s3 + $0x78] sm:$0xff] }
   0x7   :  { %v62_v22 = vadd.f32 %v182_v2, %v42_v12  ;;  %vm75_vm0 = vcmp.ge.f32.partialorder %v58_v16, 0.0  ;;  %v92_v24 = vmul.f32 %v201_v9, %v58_v16  ;;  %vm76_vm1 = vcmp.ge.f32.partialorder %v59_v17, 0.0 }
   0x8   :  { %v93_v25 = vmul.f32 %v201_v9, %v59_v17  ;;  %vm77_vm2 = vcmp.ge.f32.partialorder %v60_v20, 0.0  ;;  %v94_v26 = vmul.f32 %v201_v9, %v60_v20  ;;  %vm78_vm3 = vcmp.ge.f32.partialorder %v61_v21, 0.0 }
   0x9   :  { %v95_v27 = vmul.f32 %v201_v9, %v61_v21  ;;  %v108_v30 = vsel %vm75_vm0, %v58_v16, %v92_v24  ;;  %vm79_vm4 = vcmp.ge.f32.partialorder %v62_v22, 0.0  ;;  %v96_v32 = vmul.f32 %v201_v9, %v62_v22 }
   0xa   :  { %v109_v31 = vsel %vm76_vm1, %v59_v17, %v93_v25  ;;  %124 = vst [vmem:[%s334_s4] sm:$0xff] %v108_v30  ;;  %v110_v33 = vsel %vm77_vm2, %v60_v20, %v94_v26  ;;  %v46_v39 = vmul.f32 %v177_v1, %v26_v28  ;;  %v47_v40 = vmul.f32 %v177_v1, %v27_v29 }
   0xb   :  { %v111_v34 = vsel %vm78_vm3, %v61_v21, %v95_v27  ;;  %125 = vst [vmem:[%s334_s4 + $0x8] sm:$0xff] %v109_v31  ;;  %v112_v37 = vsel %vm79_vm4, %v62_v22, %v96_v32  ;;  %vm80_vm5 = vcmp.ge.f32.partialorder %v63_v35, 0.0  ;;  %v97_v43 = vmul.f32 %v201_v9, %v63_v35 }
   0xc   :  { %126 = vst [vmem:[%s334_s4 + $0x10] sm:$0xff] %v110_v33  ;;  %vm81_vm6 = vcmp.ge.f32.partialorder %v64_v36, 0.0  ;;  %v98_v44 = vmul.f32 %v201_v9, %v64_v36  ;;  %vm82_vm7 = vcmp.ge.f32.partialorder %v65_v38, 0.0  ;;  %v99_v45 = vmul.f32 %v201_v9, %v65_v38 }
   0xd   :  { %127 = vst [vmem:[%s334_s4 + $0x18] sm:$0xff] %v111_v34  ;;  %v66_v46 = vadd.f32 %v182_v2, %v46_v39  ;;  %v67_v47 = vadd.f32 %v182_v2, %v47_v40  ;;  %v113_v49 = vsel %vm80_vm5, %v63_v35, %v97_v43  ;;  %v48_v51 = vmul.f32 %v177_v1, %v28_v41 }
   0xe   :  { %128 = vst [vmem:[%s334_s4 + $0x20] sm:$0xff] %v112_v37  ;;  %v114_v50 = vsel %vm81_vm6, %v64_v36, %v98_v44  ;;  %v49_v52 = vmul.f32 %v177_v1, %v29_v42  ;;  %v115_v56 = vsel %vm82_vm7, %v65_v38, %v99_v45  ;;  %v50_v61 = vmul.f32 %v177_v1, %v30_v48 }
   0xf   :  { %129 = vst [vmem:[%s334_s4 + $0x28] sm:$0xff] %v113_v49  ;;  %vm83_vm8 = vcmp.ge.f32.partialorder %v66_v46, 0.0  ;;  %v100_v57 = vmul.f32 %v201_v9, %v66_v46  ;;  %vm84_vm9 = vcmp.ge.f32.partialorder %v67_v47, 0.0  ;;  %v101_v58 = vmul.f32 %v201_v9, %v67_v47 }
  0x10   :  { %130 = vst [vmem:[%s334_s4 + $0x30] sm:$0xff] %v114_v50  ;;  %v68_v59 = vadd.f32 %v182_v2, %v48_v51  ;;  %v69_v60 = vadd.f32 %v182_v2, %v49_v52  ;;  %v51_v63 = vmul.f32 %v177_v1, %v31_v53  ;;  %v52_v0 = vmul.f32 %v177_v1, %v32_v54 }
  0x11   :  { %131 = vst [vmem:[%s334_s4 + $0x38] sm:$0xff] %v115_v56  ;;  %v116_v62 = vsel %vm83_vm8, %v66_v46, %v100_v57  ;;  %v53_v3 = vmul.f32 %v177_v1, %v33_v55  ;;  %v117_v4 = vsel %vm84_vm9, %v67_v47, %v101_v58  ;;  %v70_v7 = vadd.f32 %v182_v2, %v50_v61 }
  0x12   :  { %132 = vst [vmem:[%s334_s4 + $0x40] sm:$0xff] %v116_v62  ;;  %vm85_vm10 = vcmp.ge.f32.partialorder %v68_v59, 0.0  ;;  %v102_v5 = vmul.f32 %v201_v9, %v68_v59  ;;  %vm86_vm11 = vcmp.ge.f32.partialorder %v69_v60, 0.0  ;;  %v103_v6 = vmul.f32 %v201_v9, %v69_v60 }
  0x13   :  { %133 = vst [vmem:[%s334_s4 + $0x48] sm:$0xff] %v117_v4  ;;  %v71_v8 = vadd.f32 %v182_v2, %v51_v63  ;;  %v72_v1 = vadd.f32 %v182_v2, %v52_v0  ;;  %v73_v11 = vadd.f32 %v182_v2, %v53_v3  ;;  %vm87_vm12 = vcmp.ge.f32.partialorder %v70_v7, 0.0 }
  0x14   :  { %v118_v10 = vsel %vm85_vm10, %v68_v59, %v102_v5  ;;  %v119_v12 = vsel %vm86_vm11, %v69_v60, %v103_v6  ;;  %v104_v13 = vmul.f32 %v201_v9, %v70_v7 }
  0x15   :  { %134 = vst [vmem:[%s334_s4 + $0x50] sm:$0xff] %v118_v10  ;;  %vm88_vm13 = vcmp.ge.f32.partialorder %v71_v8, 0.0  ;;  %v105_v14 = vmul.f32 %v201_v9, %v71_v8  ;;  %vm89_vm14 = vcmp.ge.f32.partialorder %v72_v1, 0.0  ;;  %v106_v15 = vmul.f32 %v201_v9, %v72_v1 }
  0x16   :  { %135 = vst [vmem:[%s334_s4 + $0x58] sm:$0xff] %v119_v12  ;;  %vm90_vm15 = vcmp.ge.f32.partialorder %v73_v11, 0.0  ;;  %v120_v2 = vsel %vm87_vm12, %v70_v7, %v104_v13  ;;  %v107_v16 = vmul.f32 %v201_v9, %v73_v11 }
  0x17   :  { %136 = vst [vmem:[%s334_s4 + $0x60] sm:$0xff] %v120_v2  ;;  %v121_v17 = vsel %vm88_vm13, %v71_v8, %v105_v14  ;;  %v122_v18 = vsel %vm89_vm14, %v72_v1, %v106_v15 }
  0x18   :  { %137 = vst [vmem:[%s334_s4 + $0x68] sm:$0xff] %v121_v17  ;;  %v123_v19 = vsel %vm90_vm15, %v73_v11, %v107_v16 }
  0x19   :  { %138 = vst [vmem:[%s334_s4 + $0x70] sm:$0xff] %v122_v18 }
  0x1a   :  { %139 = vst [vmem:[%s334_s4 + $0x78] sm:$0xff] %v123_v19 }

// kernel: decoder_mdcblock1_forward.8
= control target key start
LH: loop header
LB: loop body
LE: loop exit
PB: predicated region body
PF: predicated region fallthrough
CT: control target
= control target key end

     0   :  { %vm111_vm0 = vcmask 523264   ;;  %v358_v23 = vmov 0.0   ;;  %s500_s1 = inlined_call_operand.vmem [shape: bf16[1,64,128], index: 1, kind: input, shape index: {}]   ;;  %s501_s0 = inlined_call_operand.vmem [shape: bf16[1,128,64], index: 0, kind: input, shape index: {}]   ;;  %s502_s2 = inlined_call_operand.vmem [shape: f32[1,128,128], index: 2, kind: output, shape index: {0}]   ;;  %s503_s3 = inlined_call_operand.vmem [shape: f32[1,128], index: 3, kind: output, shape index: {1}]   ;;  %s504_s4 = inlined_call_operand.vmem [shape: f32[1,128], index: 4, kind: output, shape index: {2}]  }
   0x1   :  { %v344_v0 = vld [vmem:[%s500_s1 + $0x18] sm:$0xff]  ;;  %v343_v1 = vld [vmem:[%s500_s1 + $0x10] sm:$0xff]  ;;  %v342_v2 = vld [vmem:[%s500_s1 + $0x8] sm:$0xff]  ;;  %21 = vst [vmem:[%s503_s3] sm:$0x1] %v358_v23 }
   0x2   :  { %140 = vmatpush.bf16.msra.mxu0 %v344_v0  ;;  %345 = vmatpush.bf16.msra.mxu1 %v344_v0  ;;  %v341_v3 = vld [vmem:[%s500_s1] sm:$0xff]  ;;  %v335_v5 = vld [vmem:[%s501_s0 + $0x10] sm:$0xff]  ;;  %v334_v8 = vld [vmem:[%s501_s0 + $0x8] sm:$0xff]  ;;  %22 = vst [vmem:[%s504_s4] sm:$0x1] %v358_v23 }
   0x3   :  { %346 = vmatpush.bf16.msra.mxu2 %v344_v0  ;;  %347 = vmatpush.bf16.msra.mxu3 %v344_v0  ;;  %v333_v4 = vld [vmem:[%s501_s0] sm:$0xff]  ;;  %v339_v7 = vld [vmem:[%s501_s0 + $0x30] sm:$0xff]  ;;  %v336_v9 = vld [vmem:[%s501_s0 + $0x18] sm:$0xff] }
   0x4   :  { %v337_v6 = vld [vmem:[%s501_s0 + $0x20] sm:$0xff]  ;;  %v338_v10 = vld [vmem:[%s501_s0 + $0x28] sm:$0xff]  ;;  %v340_v11 = vld [vmem:[%s501_s0 + $0x38] sm:$0xff] }
   0x6   :  { %141 = vmatpush.bf16.msra.mxu0 %v343_v1  ;;  %348 = vmatpush.bf16.msra.mxu1 %v343_v1 }
   0x7   :  { %349 = vmatpush.bf16.msra.mxu2 %v343_v1  ;;  %350 = vmatpush.bf16.msra.mxu3 %v343_v1 }
   0x9   :  { %v225_v23 = vld [vmem:[%s504_s4] sm:$0x1] }
   0xa   :  { %142 = vmatpush.bf16.msra.mxu0 %v342_v2  ;;  %351 = vmatpush.bf16.msra.mxu1 %v342_v2 }
   0xb   :  { %352 = vmatpush.bf16.msra.mxu2 %v342_v2  ;;  %353 = vmatpush.bf16.msra.mxu3 %v342_v2 }
   0xe   :  { %143 = vmatpush.bf16.msra.mxu0 %v341_v3  ;;  %354 = vmatpush.bf16.msra.mxu1 %v341_v3 }
   0xf   :  { %355 = vmatpush.bf16.msra.mxu2 %v341_v3  ;;  %356 = vmatpush.bf16.msra.mxu3 %v341_v3 }
  0x11   :  { %325 = vmatmul.msk.bf16.vlgmr.msra.gmra.mxu0 %vm111_vm0, %v333_v4  ;;  %327 = vmatmul.msk.bf16.vlgmr.msra.gmra.mxu1 %vm111_vm0, %v335_v5 }
  0x12   :  { %329 = vmatmul.msk.bf16.vlgmr.msra.gmra.mxu2 %vm111_vm0, %v337_v6  ;;  %331 = vmatmul.msk.bf16.vlgmr.msra.gmra.mxu3 %vm111_vm0, %v339_v7 }
  0x21   :  { %326 = vmatmul.msk.bf16.gmra.mxu0 %vm111_vm0, %v334_v8  ;;  %328 = vmatmul.msk.bf16.gmra.mxu1 %vm111_vm0, %v336_v9 }
  0x22   :  { %330 = vmatmul.msk.bf16.gmra.mxu2 %vm111_vm0, %v338_v10  ;;  %332 = vmatmul.msk.bf16.gmra.mxu3 %vm111_vm0, %v340_v11 }
  0x8e   :  { %v145_v12 = vpop.f32.mrf.mxu0  ;;  %v155_v13 = vpop.f32.mrf.mxu1 }
  0x8f   :  { %185 = vst [vmem:[%s502_s2] sm:$0xff] %v145_v12  ;;  %v226_v24 = vmul.f32 %v145_v12, %v145_v12  ;;  %v230_v36 = vmul.f32 %v155_v13, %v155_v13 }
  0x90   :  { %189 = vst [vmem:[%s502_s2 + $0x20] sm:$0xff] %v155_v13 }
  0x95   :  { %v165_v14 = vpop.f32.mrf.mxu2  ;;  %v434_v15 = vpop.f32.mrf.mxu3 }
  0x96   :  { %v147_v16 = vpop.f32.mrf.mxu0  ;;  %v157_v17 = vpop.f32.mrf.mxu1  ;;  %193 = vst [vmem:[%s502_s2 + $0x40] sm:$0xff] %v165_v14  ;;  %v234_v50 = vmul.f32 %v165_v14, %v165_v14  ;;  %v238_v62 = vmul.f32 %v434_v15, %v434_v15 }
  0x97   :  { %186 = vst [vmem:[%s502_s2 + $0x8] sm:$0xff] %v147_v16  ;;  %v227_v22 = vmul.f32 %v147_v16, %v147_v16  ;;  %v202_v25 = vadd.f32 %v147_v16, %v145_v12  ;;  %v231_v39 = vmul.f32 %v157_v17, %v157_v17 }
  0x98   :  { %190 = vst [vmem:[%s502_s2 + $0x28] sm:$0xff] %v157_v17 }
  0x99   :  { %197 = vst [vmem:[%s502_s2 + $0x60] sm:$0xff] %v434_v15  ;;  %v242_v27 = vadd.f32 %v227_v22, %v226_v24 }
  0x9d   :  { %v167_v18 = vpop.f32.mrf.mxu2  ;;  %v177_v19 = vpop.f32.mrf.mxu3 }
  0x9e   :  { %v150_v20 = vpop.f32.mrf.mxu0  ;;  %v160_v21 = vpop.f32.mrf.mxu1  ;;  %194 = vst [vmem:[%s502_s2 + $0x48] sm:$0xff] %v167_v18  ;;  %v235_v53 = vmul.f32 %v167_v18, %v167_v18  ;;  %v239_v1 = vmul.f32 %v177_v19, %v177_v19 }
  0x9f   :  { %187 = vst [vmem:[%s502_s2 + $0x10] sm:$0xff] %v150_v20  ;;  %v228_v26 = vmul.f32 %v150_v20, %v150_v20  ;;  %v203_v28 = vadd.f32 %v202_v25, %v150_v20  ;;  %v232_v42 = vmul.f32 %v160_v21, %v160_v21 }
  0xa0   :  { %191 = vst [vmem:[%s502_s2 + $0x30] sm:$0xff] %v160_v21 }
  0xa1   :  { %198 = vst [vmem:[%s502_s2 + $0x68] sm:$0xff] %v177_v19  ;;  %v243_v33 = vadd.f32 %v242_v27, %v228_v26 }
  0xa5   :  { %v170_v29 = vpop.f32.mrf.mxu2  ;;  %v180_v30 = vpop.f32.mrf.mxu3 }
  0xa6   :  { %v152_v31 = vpop.f32.mrf.mxu0  ;;  %v162_v32 = vpop.f32.mrf.mxu1  ;;  %195 = vst [vmem:[%s502_s2 + $0x50] sm:$0xff] %v170_v29  ;;  %v236_v57 = vmul.f32 %v170_v29, %v170_v29  ;;  %v240_v5 = vmul.f32 %v180_v30, %v180_v30 }
  0xa7   :  { %188 = vst [vmem:[%s502_s2 + $0x18] sm:$0xff] %v152_v31  ;;  %v204_v34 = vadd.f32 %v203_v28, %v152_v31  ;;  %v229_v35 = vmul.f32 %v152_v31, %v152_v31  ;;  %v233_v48 = vmul.f32 %v162_v32, %v162_v32 }
  0xa8   :  { %192 = vst [vmem:[%s502_s2 + $0x38] sm:$0xff] %v162_v32 }
  0xa9   :  { %v205_v37 = vadd.f32 %v204_v34, %v155_v13  ;;  %v244_v38 = vadd.f32 %v243_v33, %v229_v35  ;;  %199 = vst [vmem:[%s502_s2 + $0x70] sm:$0xff] %v180_v30 }
  0xab   :  { %v245_v40 = vadd.f32 %v244_v38, %v230_v36  ;;  %v206_v41 = vadd.f32 %v205_v37, %v157_v17 }
  0xad   :  { %v207_v43 = vadd.f32 %v206_v41, %v160_v21  ;;  %v246_v44 = vadd.f32 %v245_v40, %v231_v39  ;;  %v172_v45 = vpop.f32.mrf.mxu2  ;;  %v182_v46 = vpop.f32.mrf.mxu3 }
  0xae   :  { %196 = vst [vmem:[%s502_s2 + $0x58] sm:$0xff] %v172_v45  ;;  %v237_v61 = vmul.f32 %v172_v45, %v172_v45  ;;  %v241_v9 = vmul.f32 %v182_v46, %v182_v46 }
  0xaf   :  { %v208_v47 = vadd.f32 %v207_v43, %v162_v32  ;;  %v247_v49 = vadd.f32 %v246_v44, %v232_v42  ;;  %200 = vst [vmem:[%s502_s2 + $0x78] sm:$0xff] %v182_v46 }
  0xb1   :  { %v209_v51 = vadd.f32 %v208_v47, %v165_v14  ;;  %v248_v52 = vadd.f32 %v247_v49, %v233_v48 }
  0xb3   :  { %v249_v54 = vadd.f32 %v248_v52, %v234_v50  ;;  %v210_v55 = vadd.f32 %v209_v51, %v167_v18 }
  0xb5   :  { %v211_v56 = vadd.f32 %v210_v55, %v170_v29  ;;  %v250_v58 = vadd.f32 %v249_v54, %v235_v53 }
  0xb7   :  { %v251_v59 = vadd.f32 %v250_v58, %v236_v57  ;;  %v212_v60 = vadd.f32 %v211_v56, %v172_v45 }
  0xb9   :  { %v213_v63 = vadd.f32 %v212_v60, %v434_v15  ;;  %v252_v0 = vadd.f32 %v251_v59, %v237_v61 }
  0xbb   :  { %v253_v2 = vadd.f32 %v252_v0, %v238_v62  ;;  %v214_v3 = vadd.f32 %v213_v63, %v177_v19  ;;  %v201_v19 = vld [vmem:[%s503_s3] sm:$0x1] }
  0xbd   :  { %v215_v4 = vadd.f32 %v214_v3, %v180_v30  ;;  %v254_v6 = vadd.f32 %v253_v2, %v239_v1 }
  0xbf   :  { %v255_v7 = vadd.f32 %v254_v6, %v240_v5  ;;  %v216_v8 = vadd.f32 %v215_v4, %v182_v46 }
  0xc1   :  { %v217_v10 = vrot.slane %v216_v8, 4  ;;  %v256_v11 = vadd.f32 %v255_v7, %v241_v9 }
  0xc3   :  { %v218_v12 = vadd.f32 %v217_v10, %v216_v8  ;;  %v257_v13 = vrot.slane %v256_v11, 4 }
  0xc5   :  { %v219_v14 = vrot.slane %v218_v12, 2  ;;  %v258_v16 = vadd.f32 %v257_v13, %v256_v11 }
  0xc7   :  { %v220_v17 = vadd.f32 %v219_v14, %v218_v12  ;;  %v259_v18 = vrot.slane %v258_v16, 2 }
  0xc9   :  { %v221_v20 = vrot.slane %v220_v17, 1  ;;  %v260_v15 = vadd.f32 %v259_v18, %v258_v16 }
  0xcb   :  { %v222_v21 = vadd.f32 %v221_v20, %v220_v17  ;;  %v261_v22 = vrot.slane %v260_v15, 1 }
  0xcd   :  { %v223_v24 = vadd.f32 %v222_v21, %v201_v19  ;;  %v262_v25 = vadd.f32 %v261_v22, %v260_v15 }
  0xcf   :  { %224 = vst [vmem:[%s503_s3] sm:$0x1] %v223_v24  ;;  %v263_v26 = vadd.f32 %v262_v25, %v225_v23 }
  0xd1   :  { %264 = vst [vmem:[%s504_s4] sm:$0x1] %v263_v26 }

// kernel: decoder_mdcblock1_forward.11
= control target key start
LH: loop header
LB: loop body
LE: loop exit
PB: predicated region body
PF: predicated region fallthrough
CT: control target
= control target key end

     0   :  { %s120_s1 = inlined_call_operand.vmem [shape: f32[1,128], index: 1, kind: input, shape index: {}]   ;;  %s121_s2 = inlined_call_operand.vmem [shape: f32[1,128], index: 2, kind: input, shape index: {}]   ;;  %s122_s3 = inlined_call_operand.vmem [shape: f32[1,32,128], index: 3, kind: input, shape index: {}]   ;;  %s123_s0 = inlined_call_operand.<no memory space> [shape: f32[1], index: 0, kind: input, shape index: {}]   ;;  %s124_s4 = inlined_call_operand.vmem [shape: f32[1,32,128], index: 4, kind: output, shape index: {}]  }
   0x1   :  { %v18_v0 = vld [vmem:[%s122_s3] sm:$0xff]  ;;  %v19_v3 = vld [vmem:[%s122_s3 + $0x8] sm:$0xff]  ;;  %v20_v6 = vld [vmem:[%s122_s3 + $0x10] sm:$0xff]  ;;  %v43_v8 = vstv %s123_s0 }
   0x2   :  { %v60_v1 = vld [vmem:[%s120_s1] ss:$0 sm:$0xff]  ;;  %v21_v7 = vld [vmem:[%s122_s3 + $0x18] sm:$0xff] }
   0x3   :  { %v61_v2 = vld [vmem:[%s121_s2] ss:$0 sm:$0xff]  ;;  %v26_v4 = vmul.f32 %v60_v1, %v18_v0  ;;  %v27_v5 = vmul.f32 %v60_v1, %v19_v3  ;;  %v28_v9 = vmul.f32 %v60_v1, %v20_v6  ;;  %v29_v10 = vmul.f32 %v60_v1, %v21_v7 }
   0x5   :  { %v34_v11 = vadd.f32 %v61_v2, %v26_v4  ;;  %v35_v12 = vadd.f32 %v61_v2, %v27_v5  ;;  %v36_v13 = vadd.f32 %v61_v2, %v28_v9  ;;  %v37_v14 = vadd.f32 %v61_v2, %v29_v10 }
   0x7   :  { %vm39_vm0 = vcmp.ge.f32.partialorder %v34_v11, 0.0  ;;  %v44_v15 = vmul.f32 %v43_v8, %v34_v11  ;;  %vm40_vm1 = vcmp.ge.f32.partialorder %v35_v12, 0.0  ;;  %v45_v16 = vmul.f32 %v43_v8, %v35_v12 }
   0x8   :  { %vm41_vm2 = vcmp.ge.f32.partialorder %v36_v13, 0.0  ;;  %v46_v17 = vmul.f32 %v43_v8, %v36_v13  ;;  %vm42_vm3 = vcmp.ge.f32.partialorder %v37_v14, 0.0  ;;  %v47_v18 = vmul.f32 %v43_v8, %v37_v14 }
   0x9   :  { %v48_v19 = vsel %vm39_vm0, %v34_v11, %v44_v15  ;;  %v49_v20 = vsel %vm40_vm1, %v35_v12, %v45_v16 }
   0xa   :  { %52 = vst [vmem:[%s124_s4] sm:$0xff] %v48_v19  ;;  %v50_v21 = vsel %vm41_vm2, %v36_v13, %v46_v17  ;;  %v51_v22 = vsel %vm42_vm3, %v37_v14, %v47_v18 }
   0xb   :  { %53 = vst [vmem:[%s124_s4 + $0x8] sm:$0xff] %v49_v20 }
   0xc   :  { %54 = vst [vmem:[%s124_s4 + $0x10] sm:$0xff] %v50_v21 }
   0xd   :  { %55 = vst [vmem:[%s124_s4 + $0x18] sm:$0xff] %v51_v22 }

// kernel: decoder_mdcblock1_forward.10
= control target key start
LH: loop header
LB: loop body
LE: loop exit
PB: predicated region body
PF: predicated region fallthrough
CT: control target
= control target key end

     0   :  { %v224_v10 = vmov 0.0   ;;  %s310_s1 = inlined_call_operand.vmem [shape: bf16[1,128,128], index: 1, kind: input, shape index: {}]   ;;  %s311_s0 = inlined_call_operand.vmem [shape: bf16[1,32,128], index: 0, kind: input, shape index: {}]   ;;  %s312_s3 = inlined_call_operand.vmem [shape: f32[1,128], index: 3, kind: output, shape index: {1}]   ;;  %s313_s4 = inlined_call_operand.vmem [shape: f32[1,128], index: 4, kind: output, shape index: {2}]   ;;  %s314_s2 = inlined_call_operand.vmem [shape: f32[1,32,128], index: 2, kind: output, shape index: {0}]  }
   0x1   :  { %v214_v0 = vld [vmem:[%s310_s1 + $0x38] sm:$0xff]  ;;  %v213_v1 = vld [vmem:[%s310_s1 + $0x30] sm:$0xff]  ;;  %v212_v2 = vld [vmem:[%s310_s1 + $0x28] sm:$0xff]  ;;  %20 = vst [vmem:[%s312_s3] sm:$0x1] %v224_v10 }
   0x2   :  { %102 = vmatpush.bf16.msra.mxu0 %v214_v0  ;;  %215 = vmatpush.bf16.msra.mxu1 %v214_v0  ;;  %v211_v3 = vld [vmem:[%s310_s1 + $0x20] sm:$0xff]  ;;  %v210_v4 = vld [vmem:[%s310_s1 + $0x18] sm:$0xff]  ;;  %v209_v5 = vld [vmem:[%s310_s1 + $0x10] sm:$0xff]  ;;  %21 = vst [vmem:[%s313_s4] sm:$0x1] %v224_v10 }
   0x3   :  { %v208_v6 = vld [vmem:[%s310_s1 + $0x8] sm:$0xff]  ;;  %v207_v7 = vld [vmem:[%s310_s1] sm:$0xff] }
   0x4   :  { %v205_v8 = vld [vmem:[%s311_s0] sm:$0xff]  ;;  %v206_v9 = vld [vmem:[%s311_s0 + $0x8] sm:$0xff] }
   0x6   :  { %103 = vmatpush.bf16.msra.mxu0 %v213_v1  ;;  %216 = vmatpush.bf16.msra.mxu1 %v213_v1 }
   0x8   :  { %v125_v34 = vld [vmem:[%s312_s3] sm:$0x1] }
   0x9   :  { %v137_v37 = vld [vmem:[%s313_s4] sm:$0x1] }
   0xa   :  { %104 = vmatpush.bf16.msra.mxu0 %v212_v2  ;;  %217 = vmatpush.bf16.msra.mxu1 %v212_v2 }
   0xe   :  { %105 = vmatpush.bf16.msra.mxu0 %v211_v3  ;;  %218 = vmatpush.bf16.msra.mxu1 %v211_v3 }
  0x12   :  { %106 = vmatpush.bf16.msra.mxu0 %v210_v4  ;;  %219 = vmatpush.bf16.msra.mxu1 %v210_v4 }
  0x16   :  { %107 = vmatpush.bf16.msra.mxu0 %v209_v5  ;;  %220 = vmatpush.bf16.msra.mxu1 %v209_v5 }
  0x1a   :  { %108 = vmatpush.bf16.msra.mxu0 %v208_v6  ;;  %221 = vmatpush.bf16.msra.mxu1 %v208_v6 }
  0x1e   :  { %109 = vmatpush.bf16.msra.mxu0 %v207_v7  ;;  %222 = vmatpush.bf16.msra.mxu1 %v207_v7 }
  0x21   :  { %110 = vmatmul.bf16.vlgmr.msra.gmra.mxu0 %v205_v8  ;;  %115 = vmatmul.bf16.vlgmr.msra.gmra.mxu1 %v206_v9 }
  0x9e   :  { %v111_v11 = vpop.f32.mrf.mxu0  ;;  %v116_v12 = vpop.f32.mrf.mxu1 }
  0x9f   :  { %121 = vst [vmem:[%s314_s2] sm:$0xff] %v111_v11  ;;  %v138_v15 = vmul.f32 %v111_v11, %v111_v11  ;;  %v140_v18 = vmul.f32 %v116_v12, %v116_v12 }
  0xa0   :  { %123 = vst [vmem:[%s314_s2 + $0x10] sm:$0xff] %v116_v12 }
  0xa6   :  { %v113_v13 = vpop.f32.mrf.mxu0  ;;  %v118_v14 = vpop.f32.mrf.mxu1 }
  0xa7   :  { %122 = vst [vmem:[%s314_s2 + $0x8] sm:$0xff] %v113_v13  ;;  %v126_v16 = vadd.f32 %v113_v13, %v111_v11  ;;  %v139_v17 = vmul.f32 %v113_v13, %v113_v13  ;;  %v141_v22 = vmul.f32 %v118_v14, %v118_v14 }
  0xa8   :  { %124 = vst [vmem:[%s314_s2 + $0x18] sm:$0xff] %v118_v14 }
  0xa9   :  { %v142_v19 = vadd.f32 %v139_v17, %v138_v15  ;;  %v127_v20 = vadd.f32 %v126_v16, %v116_v12 }
  0xab   :  { %v128_v21 = vadd.f32 %v127_v20, %v118_v14  ;;  %v143_v23 = vadd.f32 %v142_v19, %v140_v18 }
  0xad   :  { %v129_v24 = vrot.slane %v128_v21, 4  ;;  %v144_v25 = vadd.f32 %v143_v23, %v141_v22 }
  0xaf   :  { %v130_v26 = vadd.f32 %v129_v24, %v128_v21  ;;  %v145_v27 = vrot.slane %v144_v25, 4 }
  0xb1   :  { %v131_v28 = vrot.slane %v130_v26, 2  ;;  %v146_v29 = vadd.f32 %v145_v27, %v144_v25 }
  0xb3   :  { %v132_v30 = vadd.f32 %v131_v28, %v130_v26  ;;  %v147_v31 = vrot.slane %v146_v29, 2 }
  0xb5   :  { %v133_v32 = vrot.slane %v132_v30, 1  ;;  %v148_v33 = vadd.f32 %v147_v31, %v146_v29 }
  0xb7   :  { %v134_v35 = vadd.f32 %v133_v32, %v132_v30  ;;  %v149_v36 = vrot.slane %v148_v33, 1 }
  0xb9   :  { %v135_v38 = vadd.f32 %v134_v35, %v125_v34  ;;  %v150_v39 = vadd.f32 %v149_v36, %v148_v33 }
  0xbb   :  { %136 = vst [vmem:[%s312_s3] sm:$0x1] %v135_v38  ;;  %v151_v40 = vadd.f32 %v150_v39, %v137_v37 }
  0xbd   :  { %152 = vst [vmem:[%s313_s4] sm:$0x1] %v151_v40 }

// kernel: decoder_mdcblock1_forward.12
= control target key start
LH: loop header
LB: loop body
LE: loop exit
PB: predicated region body
PF: predicated region fallthrough
CT: control target
= control target key end

     0   :  { %s605_s15 = smov 0   ;;  %s607_s16 = smov 0   ;;  %s665_s0 = inlined_call_operand.vmem [shape: bf16[4,32,64], index: 0, kind: input, shape index: {}]   ;;  %s666_s1 = inlined_call_operand.vmem [shape: bf16[4,64,128], index: 1, kind: input, shape index: {}]   ;;  %s667_s2 = inlined_call_operand.vmem [shape: f32[4,32,128], index: 2, kind: output, shape index: {0}]   ;;  %s668_s3 = inlined_call_operand.vmem [shape: f32[1,128], index: 3, kind: output, shape index: {1}]   ;;  %s669_s4 = inlined_call_operand.vmem [shape: f32[1,128], index: 4, kind: output, shape index: {2}]  }
   0x1   :  { %s609_s17 = smov 0  }
   0x2 LB: > { %s27_s18 = sadd.s32 1, %s573_s16  ;;  %p480_p0 = scmp.ge.s32.totalorder %s577_s17, 1  ;;  %s577_s17 = sphi %s609_s17, %s15_s17   ;;  %s573_s16 = sphi %s607_s16, %s671_s16   ;;  %s569_s15 = sphi %s605_s15, %s670_s15  }
   0x3   : > { %p29_p1 = scmp.ge.s32.totalorder %s27_s18, 4  ;;  %p188_p2 = scmp.lt.s32.totalorder %s577_s17, 5 }
   0x5   : > { %s673_s18 = smov (%p29_p1, %s27_s18), 0  ;;  %p189_p3 = pnand %p480_p0, %p188_p2 }
   0x6   : > { %p228_p4 = scmp.lt.s32.totalorder (!%p189_p3), %s569_s15, 3  ;;  %p253_p5 = scmp.eq.s32.totalorder (!%p189_p3), %s569_s15, 0 }
   0x7   : > { %192 = sbr.rel (%p189_p3) target bundleno = 190 (0xbe), region = 28 }
   0xc   : > { %s675_s15 = smov (!%p228_p4, %s569_s15), 3  ;;  %258 = sbr.rel (!%p253_p5) target bundleno = 17 (0x11), region = 32  ;;  %v579_v0 = vmov (%p253_p5), 0.0  }
   0xd   : > { %s516_s19 = sshll.u32 %s675_s15, 4  ;;  %s517_s20 = sshll.u32 %s675_s15, 5  ;;  %259 = vst [vmem:[%s668_s3] sm:$0x1] (%p253_p5), %v579_v0 }
   0xe   : > { %s235_s23 = scalar_lea.vmem %s665_s0, %s516_s19  ;;  %s241_s26 = scalar_lea.vmem %s666_s1, %s517_s20  ;;  %260 = vst [vmem:[%s669_s4] sm:$0x1] (%p253_p5), %v579_v0 }
   0xf   : > { %s632_s29 = scalar_lea.vmem %s667_s2, %s517_s20 }
  0x11 PF: > { %v525_v1 = vld [vmem:[%s241_s26 + $0x18] sm:$0xff]  ;;  %v524_v2 = vld [vmem:[%s241_s26 + $0x10] sm:$0xff]  ;;  %v523_v3 = vld [vmem:[%s241_s26 + $0x8] sm:$0xff]  ;;  %vm307_vm0 = vcmask 523264  }
  0x12   : > { %318 = vmatpush.bf16.msra.mxu0 %v525_v1  ;;  %526 = vmatpush.bf16.msra.mxu1 %v525_v1  ;;  %v522_v4 = vld [vmem:[%s241_s26] sm:$0xff]  ;;  %v521_v6 = vld [vmem:[%s235_s23 + $0x8] sm:$0xff] }
  0x13   : > { %v520_v5 = vld [vmem:[%s235_s23] sm:$0xff] }
  0x14   : > { %v337_v30 = vld [vmem:[%s668_s3] sm:$0x1] }
  0x15   : > { %v349_v33 = vld [vmem:[%s669_s4] sm:$0x1] }
  0x16   : > { %319 = vmatpush.bf16.msra.mxu0 %v524_v2  ;;  %527 = vmatpush.bf16.msra.mxu1 %v524_v2 }
  0x1a   : > { %320 = vmatpush.bf16.msra.mxu0 %v523_v3  ;;  %528 = vmatpush.bf16.msra.mxu1 %v523_v3 }
  0x1e   : > { %321 = vmatpush.bf16.msra.mxu0 %v522_v4  ;;  %529 = vmatpush.bf16.msra.mxu1 %v522_v4 }
  0x21   : > { %512 = vmatmul.msk.bf16.vlgmr.msra.gmra.mxu0 %vm307_vm0, %v520_v5  ;;  %513 = vmatmul.msk.bf16.vlgmr.msra.gmra.mxu1 %vm307_vm0, %v521_v6 }
  0x9e   : > { %v323_v7 = vpop.f32.mrf.mxu0  ;;  %v328_v8 = vpop.f32.mrf.mxu1 }
  0x9f   : > { %333 = vst [vmem:[%s632_s29] sm:$0xff] %v323_v7  ;;  %v350_v11 = vmul.f32 %v323_v7, %v323_v7  ;;  %v352_v14 = vmul.f32 %v328_v8, %v328_v8 }
  0xa0   : > { %335 = vst [vmem:[%s632_s29 + $0x10] sm:$0xff] %v328_v8 }
  0xa6   : > { %v325_v9 = vpop.f32.mrf.mxu0  ;;  %v330_v10 = vpop.f32.mrf.mxu1 }
  0xa7   : > { %334 = vst [vmem:[%s632_s29 + $0x8] sm:$0xff] %v325_v9  ;;  %v338_v12 = vadd.f32 %v325_v9, %v323_v7  ;;  %v351_v13 = vmul.f32 %v325_v9, %v325_v9  ;;  %v353_v18 = vmul.f32 %v330_v10, %v330_v10 }
  0xa8   : > { %336 = vst [vmem:[%s632_s29 + $0x18] sm:$0xff] %v330_v10 }
  0xa9   : > { %v354_v15 = vadd.f32 %v351_v13, %v350_v11  ;;  %v339_v16 = vadd.f32 %v338_v12, %v328_v8 }
  0xab   : > { %v340_v17 = vadd.f32 %v339_v16, %v330_v10  ;;  %v355_v19 = vadd.f32 %v354_v15, %v352_v14 }
  0xad   : > { %v341_v20 = vrot.slane %v340_v17, 4  ;;  %v356_v21 = vadd.f32 %v355_v19, %v353_v18 }
  0xaf   : > { %v342_v22 = vadd.f32 %v341_v20, %v340_v17  ;;  %v357_v23 = vrot.slane %v356_v21, 4 }
  0xb1   : > { %v343_v24 = vrot.slane %v342_v22, 2  ;;  %v358_v25 = vadd.f32 %v357_v23, %v356_v21 }
  0xb3   : > { %v344_v26 = vadd.f32 %v343_v24, %v342_v22  ;;  %v359_v27 = vrot.slane %v358_v25, 2 }
  0xb5   : > { %v345_v28 = vrot.slane %v344_v26, 1  ;;  %v360_v29 = vadd.f32 %v359_v27, %v358_v25 }
  0xb7   : > { %v346_v31 = vadd.f32 %v345_v28, %v344_v26  ;;  %v361_v32 = vrot.slane %v360_v29, 1 }
  0xb9   : > { %v347_v34 = vadd.f32 %v346_v31, %v337_v30  ;;  %v362_v35 = vadd.f32 %v361_v32, %v360_v29 }
  0xbb   : > { %348 = vst [vmem:[%s668_s3] sm:$0x1] %v347_v34  ;;  %v363_v36 = vadd.f32 %v362_v35, %v349_v33 }
  0xbd   : > { %364 = vst [vmem:[%s669_s4] sm:$0x1] %v363_v36 }
  0xbe PF: > { %s15_s17 = sadd.s32 1, %s577_s17   ;;  %s670_s15 = smov %s573_s16 }
  0xbf   : > { %p12_p6 = scmp.ge.s32.totalorder %s15_s17, 6   ;;  %s671_s16 = smov %s673_s18 }
  0xc1   :  { %14 = sbr.rel (!%p12_p6) target bundleno = 2 (0x2), region = 81 }

// kernel: decoder_mdcblock1_forward.13
= control target key start
LH: loop header
LB: loop body
LE: loop exit
PB: predicated region body
PF: predicated region fallthrough
CT: control target
= control target key end

     0   :  { %s551_s20 = smov 0   ;;  %s553_s21 = smov 0   ;;  %s593_s0 = inlined_call_operand.<no memory space> [shape: f32[1], index: 0, kind: input, shape index: {}]   ;;  %s594_s1 = inlined_call_operand.vmem [shape: f32[1,128], index: 1, kind: input, shape index: {}]   ;;  %s595_s2 = inlined_call_operand.vmem [shape: f32[1,128], index: 2, kind: input, shape index: {}]   ;;  %s596_s3 = inlined_call_operand.vmem [shape: f32[4,32,128], index: 3, kind: input, shape index: {}]   ;;  %s597_s4 = inlined_call_operand.vmem [shape: f32[4,32,128], index: 4, kind: input, shape index: {}]   ;;  %s598_s5 = inlined_call_operand.vmem [shape: f32[4,32,128], index: 5, kind: output, shape index: {}]  }
   0x1   :  { %10 = sst [smem:[#allocation2]] %s593_s0  ;;  %s555_s22 = smov 0  }
   0x2 LB: > { %s28_s0 = sadd.s32 1, %s512_s21  ;;  %p456_p0 = scmp.ge.s32.totalorder %s516_s22, 1  ;;  %s516_s22 = sphi %s555_s22, %s16_s22   ;;  %s512_s21 = sphi %s553_s21, %s600_s21   ;;  %s508_s20 = sphi %s551_s20, %s599_s20  }
   0x3   : > { %p30_p1 = scmp.ge.s32.totalorder %s28_s0, 4  ;;  %p226_p2 = scmp.lt.s32.totalorder %s516_s22, 5 }
   0x5   : > { %s602_s0 = smov (%p30_p1, %s28_s0), 0  ;;  %p227_p3 = pnand %p456_p0, %p226_p2 }
   0x6   : > { %p272_p4 = scmp.lt.s32.totalorder (!%p227_p3), %s508_s20, 3  ;;  %s321_s23 = sld [smem:[#allocation2]] (!%p227_p3) }
   0x7   : > { %230 = sbr.rel (%p227_p3) target bundleno = 29 (0x1d), region = 40 }
   0xc   : > { %s604_s20 = smov (!%p272_p4, %s508_s20), 3  ;;  %v492_v0 = vld [vmem:[%s594_s1] ss:$0 sm:$0xff]  ;;  %v326_v7 = vstv %s321_s23 }
   0xd   : > { %s465_s26 = sshll.u32 %s604_s20, 5  ;;  %v493_v1 = vld [vmem:[%s595_s2] ss:$0 sm:$0xff] }
   0xe   : > { %s279_s29 = scalar_lea.vmem %s596_s3, %s465_s26  ;;  %s289_s9 = scalar_lea.vmem %s597_s4, %s465_s26 }
   0xf   : > { %v301_v2 = vld [vmem:[%s279_s29] sm:$0xff]  ;;  %v302_v3 = vld [vmem:[%s279_s29 + $0x8] sm:$0xff]  ;;  %v303_v6 = vld [vmem:[%s279_s29 + $0x10] sm:$0xff]  ;;  %s299_s12 = scalar_lea.vmem %s598_s5, %s465_s26 }
  0x10   : > { %v309_v4 = vmul.f32 %v492_v0, %v301_v2  ;;  %v310_v5 = vmul.f32 %v492_v0, %v302_v3  ;;  %v311_v8 = vmul.f32 %v492_v0, %v303_v6  ;;  %v304_v9 = vld [vmem:[%s279_s29 + $0x18] sm:$0xff]  ;;  %v335_v15 = vld [vmem:[%s289_s9] sm:$0xff]  ;;  %v336_v17 = vld [vmem:[%s289_s9 + $0x8] sm:$0xff] }
  0x11   : > { %v312_v12 = vmul.f32 %v492_v0, %v304_v9  ;;  %v337_v19 = vld [vmem:[%s289_s9 + $0x10] sm:$0xff]  ;;  %v338_v28 = vld [vmem:[%s289_s9 + $0x18] sm:$0xff] }
  0x12   : > { %v317_v10 = vadd.f32 %v493_v1, %v309_v4  ;;  %v318_v11 = vadd.f32 %v493_v1, %v310_v5  ;;  %v319_v13 = vadd.f32 %v493_v1, %v311_v8 }
  0x13   : > { %v320_v20 = vadd.f32 %v493_v1, %v312_v12 }
  0x14   : > { %vm322_vm0 = vcmp.ge.f32.partialorder %v317_v10, 0.0  ;;  %v327_v14 = vmul.f32 %v326_v7, %v317_v10  ;;  %vm323_vm1 = vcmp.ge.f32.partialorder %v318_v11, 0.0  ;;  %v328_v16 = vmul.f32 %v326_v7, %v318_v11 }
  0x15   : > { %vm324_vm2 = vcmp.ge.f32.partialorder %v319_v13, 0.0  ;;  %v329_v18 = vmul.f32 %v326_v7, %v319_v13  ;;  %vm325_vm3 = vcmp.ge.f32.partialorder %v320_v20, 0.0  ;;  %v330_v27 = vmul.f32 %v326_v7, %v320_v20 }
  0x16   : > { %v331_v21 = vsel %vm322_vm0, %v317_v10, %v327_v14  ;;  %v332_v22 = vsel %vm323_vm1, %v318_v11, %v328_v16 }
  0x17   : > { %v339_v23 = vadd.f32 %v335_v15, %v331_v21  ;;  %v340_v24 = vadd.f32 %v336_v17, %v332_v22  ;;  %v333_v25 = vsel %vm324_vm2, %v319_v13, %v329_v18  ;;  %v334_v29 = vsel %vm325_vm3, %v320_v20, %v330_v27 }
  0x18   : > { %v341_v26 = vadd.f32 %v337_v19, %v333_v25  ;;  %v342_v30 = vadd.f32 %v338_v28, %v334_v29 }
  0x19   : > { %343 = vst [vmem:[%s299_s12] sm:$0xff] %v339_v23 }
  0x1a   : > { %344 = vst [vmem:[%s299_s12 + $0x8] sm:$0xff] %v340_v24 }
  0x1b   : > { %345 = vst [vmem:[%s299_s12 + $0x10] sm:$0xff] %v341_v26 }
  0x1c   : > { %346 = vst [vmem:[%s299_s12 + $0x18] sm:$0xff] %v342_v30 }
  0x1d PF: > { %s16_s22 = sadd.s32 1, %s516_s22   ;;  %s599_s20 = smov %s512_s21 }
  0x1e   : > { %p13_p5 = scmp.ge.s32.totalorder %s16_s22, 6   ;;  %s600_s21 = smov %s602_s0 }
  0x20   :  { %15 = sbr.rel (!%p13_p5) target bundleno = 2 (0x2), region = 73 }

// kernel: decoder_mdcblock1_forward.15
= control target key start
LH: loop header
LB: loop body
LE: loop exit
PB: predicated region body
PF: predicated region fallthrough
CT: control target
= control target key end

     0   :  { %s659_s20 = smov 0   ;;  %s661_s21 = smov 0   ;;  %s816_s0 = inlined_call_operand.<no memory space> [shape: f32[1], index: 0, kind: input, shape index: {}]   ;;  %s817_s1 = inlined_call_operand.vmem [shape: f32[1,128], index: 1, kind: input, shape index: {}]   ;;  %s818_s2 = inlined_call_operand.vmem [shape: f32[1,128], index: 2, kind: input, shape index: {}]   ;;  %s819_s3 = inlined_call_operand.vmem [shape: f32[4,128,128], index: 3, kind: input, shape index: {}]   ;;  %s820_s4 = inlined_call_operand.vmem [shape: f32[4,128,128], index: 4, kind: input, shape index: {}]   ;;  %s821_s5 = inlined_call_operand.vmem [shape: f32[4,128,128], index: 5, kind: output, shape index: {}]  }
   0x1   :  { %10 = sst [smem:[#allocation2]] %s816_s0  ;;  %s663_s22 = smov 0  }
   0x2 LB: > { %s28_s0 = sadd.s32 1, %s620_s21  ;;  %p564_p0 = scmp.ge.s32.totalorder %s624_s22, 1  ;;  %s624_s22 = sphi %s663_s22, %s16_s22   ;;  %s620_s21 = sphi %s661_s21, %s823_s21   ;;  %s616_s20 = sphi %s659_s20, %s822_s20  }
   0x3   : > { %p30_p1 = scmp.ge.s32.totalorder %s28_s0, 4  ;;  %p226_p2 = scmp.lt.s32.totalorder %s624_s22, 5 }
   0x5   : > { %s825_s0 = smov (%p30_p1, %s28_s0), 0  ;;  %p227_p3 = pnand %p564_p0, %p226_p2 }
   0x6   : > { %p272_p4 = scmp.lt.s32.totalorder (!%p227_p3), %s616_s20, 3  ;;  %s357_s23 = sld [smem:[#allocation2]] (!%p227_p3) }
   0x7   : > { %230 = sbr.rel (%p227_p3) target bundleno = 46 (0x2e), region = 40 }
   0xc   : > { %s827_s20 = smov (!%p272_p4, %s616_s20), 3  ;;  %v680_v0 = vld [vmem:[%s817_s1] ss:$0 sm:$0xff]  ;;  %v706_v7 = vstv %s357_s23 }
   0xd   : > { %s682_s26 = sshll.u32 %s827_s20, 7  ;;  %v693_v1 = vld [vmem:[%s818_s2] ss:$0 sm:$0xff] }
   0xe   : > { %s688_s29 = scalar_lea.vmem %s819_s3, %s682_s26  ;;  %s704_s9 = scalar_lea.vmem %s820_s4, %s682_s26 }
   0xf   : > { %v301_v2 = vld [vmem:[%s688_s29] sm:$0xff]  ;;  %v302_v3 = vld [vmem:[%s688_s29 + $0x8] sm:$0xff]  ;;  %v303_v6 = vld [vmem:[%s688_s29 + $0x10] sm:$0xff]  ;;  %s731_s12 = scalar_lea.vmem %s821_s5, %s682_s26 }
  0x10   : > { %v321_v4 = vmul.f32 %v680_v0, %v301_v2  ;;  %v322_v5 = vmul.f32 %v680_v0, %v302_v3  ;;  %v323_v8 = vmul.f32 %v680_v0, %v303_v6  ;;  %v304_v9 = vld [vmem:[%s688_s29 + $0x18] sm:$0xff]  ;;  %v305_v10 = vld [vmem:[%s688_s29 + $0x20] sm:$0xff]  ;;  %v306_v15 = vld [vmem:[%s688_s29 + $0x28] sm:$0xff] }
  0x11   : > { %v324_v13 = vmul.f32 %v680_v0, %v304_v9  ;;  %v325_v14 = vmul.f32 %v680_v0, %v305_v10  ;;  %v326_v17 = vmul.f32 %v680_v0, %v306_v15  ;;  %v307_v18 = vld [vmem:[%s688_s29 + $0x30] sm:$0xff]  ;;  %v407_v20 = vld [vmem:[%s704_s9] sm:$0xff]  ;;  %v408_v22 = vld [vmem:[%s704_s9 + $0x8] sm:$0xff] }
  0x12   : > { %v341_v11 = vadd.f32 %v693_v1, %v321_v4  ;;  %v342_v12 = vadd.f32 %v693_v1, %v322_v5  ;;  %v343_v16 = vadd.f32 %v693_v1, %v323_v8  ;;  %v409_v24 = vld [vmem:[%s704_s9 + $0x10] sm:$0xff]  ;;  %v327_v30 = vmul.f32 %v680_v0, %v307_v18  ;;  %v308_v31 = vld [vmem:[%s688_s29 + $0x38] sm:$0xff]  ;;  %v309_v35 = vld [vmem:[%s688_s29 + $0x40] sm:$0xff] }
  0x13   : > { %v344_v25 = vadd.f32 %v693_v1, %v324_v13  ;;  %v345_v26 = vadd.f32 %v693_v1, %v325_v14  ;;  %v346_v29 = vadd.f32 %v693_v1, %v326_v17  ;;  %v310_v36 = vld [vmem:[%s688_s29 + $0x48] sm:$0xff]  ;;  %v410_v39 = vld [vmem:[%s704_s9 + $0x18] sm:$0xff]  ;;  %v411_v41 = vld [vmem:[%s704_s9 + $0x20] sm:$0xff]  ;;  %v328_v45 = vmul.f32 %v680_v0, %v308_v31 }
  0x14   : > { %vm358_vm0 = vcmp.ge.f32.partialorder %v341_v11, 0.0  ;;  %v375_v19 = vmul.f32 %v706_v7, %v341_v11  ;;  %vm359_vm1 = vcmp.ge.f32.partialorder %v342_v12, 0.0  ;;  %v376_v21 = vmul.f32 %v706_v7, %v342_v12  ;;  %v412_v43 = vld [vmem:[%s704_s9 + $0x28] sm:$0xff]  ;;  %v311_v50 = vld [vmem:[%s688_s29 + $0x50] sm:$0xff]  ;;  %v312_v51 = vld [vmem:[%s688_s29 + $0x58] sm:$0xff] }
  0x15   : > { %vm360_vm2 = vcmp.ge.f32.partialorder %v343_v16, 0.0  ;;  %v377_v23 = vmul.f32 %v706_v7, %v343_v16  ;;  %vm361_vm3 = vcmp.ge.f32.partialorder %v344_v25, 0.0  ;;  %v378_v38 = vmul.f32 %v706_v7, %v344_v25  ;;  %v313_v52 = vld [vmem:[%s688_s29 + $0x60] sm:$0xff]  ;;  %v413_v58 = vld [vmem:[%s704_s9 + $0x30] sm:$0xff]  ;;  %v414_v5 = vld [vmem:[%s704_s9 + $0x38] sm:$0xff] }
  0x16   : > { %v391_v27 = vsel %vm358_vm0, %v341_v11, %v375_v19  ;;  %v392_v28 = vsel %vm359_vm1, %v342_v12, %v376_v21  ;;  %vm362_vm4 = vcmp.ge.f32.partialorder %v345_v26, 0.0  ;;  %v379_v40 = vmul.f32 %v706_v7, %v345_v26  ;;  %v314_v6 = vld [vmem:[%s688_s29 + $0x68] sm:$0xff]  ;;  %v415_v10 = vld [vmem:[%s704_s9 + $0x40] sm:$0xff]  ;;  %v315_v21 = vld [vmem:[%s688_s29 + $0x70] sm:$0xff] }
  0x17   : > { %v423_v32 = vadd.f32 %v407_v20, %v391_v27  ;;  %v424_v33 = vadd.f32 %v408_v22, %v392_v28  ;;  %v393_v34 = vsel %vm360_vm2, %v343_v16, %v377_v23  ;;  %vm363_vm5 = vcmp.ge.f32.partialorder %v346_v29, 0.0  ;;  %v416_v12 = vld [vmem:[%s704_s9 + $0x48] sm:$0xff]  ;;  %v316_v22 = vld [vmem:[%s688_s29 + $0x78] sm:$0xff] }
  0x18   : > { %v425_v37 = vadd.f32 %v409_v24, %v393_v34  ;;  %v380_v42 = vmul.f32 %v706_v7, %v346_v29  ;;  %v347_v44 = vadd.f32 %v693_v1, %v327_v30  ;;  %v394_v46 = vsel %vm361_vm3, %v344_v25, %v378_v38  ;;  %v418_v28 = vld [vmem:[%s704_s9 + $0x58] sm:$0xff]  ;;  %v419_v30 = vld [vmem:[%s704_s9 + $0x60] sm:$0xff] }
  0x19   : > { %439 = vst [vmem:[%s731_s12] sm:$0xff] %v423_v32  ;;  %v395_v47 = vsel %vm362_vm4, %v345_v26, %v379_v40  ;;  %v329_v48 = vmul.f32 %v680_v0, %v309_v35  ;;  %v330_v49 = vmul.f32 %v680_v0, %v310_v36  ;;  %v426_v53 = vadd.f32 %v410_v39, %v394_v46  ;;  %v417_v26 = vld [vmem:[%s704_s9 + $0x50] sm:$0xff] }
  0x1a   : > { %440 = vst [vmem:[%s731_s12 + $0x8] sm:$0xff] %v424_v33  ;;  %v427_v54 = vadd.f32 %v411_v41, %v395_v47  ;;  %v396_v55 = vsel %vm363_vm5, %v346_v29, %v380_v42  ;;  %vm364_vm6 = vcmp.ge.f32.partialorder %v347_v44, 0.0  ;;  %v381_v57 = vmul.f32 %v706_v7, %v347_v44  ;;  %v420_v41 = vld [vmem:[%s704_s9 + $0x68] sm:$0xff]  ;;  %v421_v46 = vld [vmem:[%s704_s9 + $0x70] sm:$0xff] }
  0x1b   : > { %441 = vst [vmem:[%s731_s12 + $0x10] sm:$0xff] %v425_v37  ;;  %v428_v56 = vadd.f32 %v412_v43, %v396_v55  ;;  %v348_v59 = vadd.f32 %v693_v1, %v328_v45  ;;  %v349_v60 = vadd.f32 %v693_v1, %v329_v48  ;;  %v350_v61 = vadd.f32 %v693_v1, %v330_v49  ;;  %v422_v48 = vld [vmem:[%s704_s9 + $0x78] sm:$0xff] }
  0x1c   : > { %442 = vst [vmem:[%s731_s12 + $0x18] sm:$0xff] %v426_v53  ;;  %v331_v62 = vmul.f32 %v680_v0, %v311_v50  ;;  %v332_v63 = vmul.f32 %v680_v0, %v312_v51  ;;  %v333_v2 = vmul.f32 %v680_v0, %v313_v52  ;;  %v397_v3 = vsel %vm364_vm6, %v347_v44, %v381_v57 }
  0x1d   : > { %443 = vst [vmem:[%s731_s12 + $0x20] sm:$0xff] %v427_v54  ;;  %vm365_vm7 = vcmp.ge.f32.partialorder %v348_v59, 0.0  ;;  %v382_v4 = vmul.f32 %v706_v7, %v348_v59  ;;  %vm366_vm8 = vcmp.ge.f32.partialorder %v349_v60, 0.0  ;;  %v429_v8 = vadd.f32 %v413_v58, %v397_v3 }
  0x1e   : > { %444 = vst [vmem:[%s731_s12 + $0x28] sm:$0xff] %v428_v56  ;;  %v383_v9 = vmul.f32 %v706_v7, %v349_v60  ;;  %vm367_vm9 = vcmp.ge.f32.partialorder %v350_v61, 0.0  ;;  %v384_v11 = vmul.f32 %v706_v7, %v350_v61  ;;  %v351_v14 = vadd.f32 %v693_v1, %v331_v62 }
  0x1f   : > { %v398_v13 = vsel %vm365_vm7, %v348_v59, %v382_v4  ;;  %v352_v15 = vadd.f32 %v693_v1, %v332_v63  ;;  %v353_v16 = vadd.f32 %v693_v1, %v333_v2  ;;  %445 = vst [vmem:[%s731_s12 + $0x30] sm:$0xff] %v429_v8  ;;  %v334_v20 = vmul.f32 %v680_v0, %v314_v6 }
  0x20   : > { %v430_v17 = vadd.f32 %v414_v5, %v398_v13  ;;  %v399_v18 = vsel %vm366_vm8, %v349_v60, %v383_v9  ;;  %v400_v19 = vsel %vm367_vm9, %v350_v61, %v384_v11  ;;  %vm368_vm10 = vcmp.ge.f32.partialorder %v351_v14, 0.0 }
  0x21   : > { %v431_v23 = vadd.f32 %v415_v10, %v399_v18  ;;  %v432_v24 = vadd.f32 %v416_v12, %v400_v19  ;;  %v385_v25 = vmul.f32 %v706_v7, %v351_v14  ;;  %vm369_vm11 = vcmp.ge.f32.partialorder %v352_v15, 0.0 }
  0x22   : > { %446 = vst [vmem:[%s731_s12 + $0x38] sm:$0xff] %v430_v17  ;;  %v386_v27 = vmul.f32 %v706_v7, %v352_v15  ;;  %vm370_vm12 = vcmp.ge.f32.partialorder %v353_v16, 0.0  ;;  %v387_v29 = vmul.f32 %v706_v7, %v353_v16  ;;  %v354_v32 = vadd.f32 %v693_v1, %v334_v20 }
  0x23   : > { %447 = vst [vmem:[%s731_s12 + $0x40] sm:$0xff] %v431_v23  ;;  %v401_v31 = vsel %vm368_vm10, %v351_v14, %v385_v25  ;;  %v335_v33 = vmul.f32 %v680_v0, %v315_v21  ;;  %v336_v34 = vmul.f32 %v680_v0, %v316_v22 }
  0x24   : > { %448 = vst [vmem:[%s731_s12 + $0x48] sm:$0xff] %v432_v24  ;;  %v433_v35 = vadd.f32 %v417_v26, %v401_v31  ;;  %v402_v36 = vsel %vm369_vm11, %v352_v15, %v386_v27  ;;  %v403_v37 = vsel %vm370_vm12, %v353_v16, %v387_v29  ;;  %vm371_vm13 = vcmp.ge.f32.partialorder %v354_v32, 0.0 }
  0x25   : > { %v434_v38 = vadd.f32 %v418_v28, %v402_v36  ;;  %v435_v39 = vadd.f32 %v419_v30, %v403_v37  ;;  %v388_v40 = vmul.f32 %v706_v7, %v354_v32  ;;  %v355_v42 = vadd.f32 %v693_v1, %v335_v33 }
  0x26   : > { %449 = vst [vmem:[%s731_s12 + $0x50] sm:$0xff] %v433_v35  ;;  %v356_v43 = vadd.f32 %v693_v1, %v336_v34 }
  0x27   : > { %450 = vst [vmem:[%s731_s12 + $0x58] sm:$0xff] %v434_v38  ;;  %v404_v0 = vsel %vm371_vm13, %v354_v32, %v388_v40  ;;  %vm372_vm14 = vcmp.ge.f32.partialorder %v355_v42, 0.0  ;;  %v389_v45 = vmul.f32 %v706_v7, %v355_v42 }
  0x28   : > { %451 = vst [vmem:[%s731_s12 + $0x60] sm:$0xff] %v435_v39  ;;  %v436_v44 = vadd.f32 %v420_v41, %v404_v0  ;;  %vm373_vm15 = vcmp.ge.f32.partialorder %v356_v43, 0.0  ;;  %v390_v47 = vmul.f32 %v706_v7, %v356_v43 }
  0x29   : > { %v405_v49 = vsel %vm372_vm14, %v355_v42, %v389_v45 }
  0x2a   : > { %452 = vst [vmem:[%s731_s12 + $0x68] sm:$0xff] %v436_v44  ;;  %v437_v50 = vadd.f32 %v421_v46, %v405_v49  ;;  %v406_v51 = vsel %vm373_vm15, %v356_v43, %v390_v47 }
  0x2b   : > { %v438_v52 = vadd.f32 %v422_v48, %v406_v51 }
  0x2c   : > { %453 = vst [vmem:[%s731_s12 + $0x70] sm:$0xff] %v437_v50 }
  0x2d   : > { %454 = vst [vmem:[%s731_s12 + $0x78] sm:$0xff] %v438_v52 }
  0x2e PF: > { %s16_s22 = sadd.s32 1, %s624_s22   ;;  %s822_s20 = smov %s620_s21 }
  0x2f   : > { %p13_p5 = scmp.ge.s32.totalorder %s16_s22, 6   ;;  %s823_s21 = smov %s825_s0 }
  0x31   :  { %15 = sbr.rel (!%p13_p5) target bundleno = 2 (0x2), region = 73 }

// kernel: decoder_mdcblock1_forward.14
= control target key start
LH: loop header
LB: loop body
LE: loop exit
PB: predicated region body
PF: predicated region fallthrough
CT: control target
= control target key end

     0   :  { %s755_s15 = smov 0   ;;  %s757_s16 = smov 0   ;;  %s845_s0 = inlined_call_operand.vmem [shape: bf16[4,128,32], index: 0, kind: input, shape index: {}]   ;;  %s846_s1 = inlined_call_operand.vmem [shape: bf16[4,32,128], index: 1, kind: input, shape index: {}]   ;;  %s847_s2 = inlined_call_operand.vmem [shape: f32[4,128,128], index: 2, kind: output, shape index: {0}]   ;;  %s848_s3 = inlined_call_operand.vmem [shape: f32[1,128], index: 3, kind: output, shape index: {1}]   ;;  %s849_s4 = inlined_call_operand.vmem [shape: f32[1,128], index: 4, kind: output, shape index: {2}]  }
   0x1   :  { %s759_s17 = smov 0  }
   0x2 LB: > { %s27_s18 = sadd.s32 1, %s723_s16  ;;  %p602_p0 = scmp.ge.s32.totalorder %s727_s17, 1  ;;  %s727_s17 = sphi %s759_s17, %s15_s17   ;;  %s723_s16 = sphi %s757_s16, %s851_s16   ;;  %s719_s15 = sphi %s755_s15, %s850_s15  }
   0x3   : > { %p29_p1 = scmp.ge.s32.totalorder %s27_s18, 4  ;;  %p188_p2 = scmp.lt.s32.totalorder %s727_s17, 5 }
   0x5   : > { %s853_s18 = smov (%p29_p1, %s27_s18), 0  ;;  %p189_p3 = pnand %p602_p0, %p188_p2 }
   0x6   : > { %p228_p4 = scmp.lt.s32.totalorder (!%p189_p3), %s719_s15, 3  ;;  %p253_p5 = scmp.eq.s32.totalorder (!%p189_p3), %s719_s15, 0 }
   0x7   : > { %192 = sbr.rel (%p189_p3) target bundleno = 218 (0xda), region = 28 }
   0xc   : > { %s855_s15 = smov (!%p228_p4, %s719_s15), 3  ;;  %258 = sbr.rel (!%p253_p5) target bundleno = 17 (0x11), region = 32  ;;  %v729_v0 = vmov (%p253_p5), 0.0  }
   0xd   : > { %s660_s19 = sshll.u32 %s855_s15, 6  ;;  %s661_s20 = sshll.u32 %s855_s15, 4  ;;  %259 = vst [vmem:[%s848_s3] sm:$0x1] (%p253_p5), %v729_v0 }
   0xe   : > { %s776_s23 = scalar_lea.vmem %s845_s0, %s660_s19  ;;  %s241_s26 = scalar_lea.vmem %s846_s1, %s661_s20  ;;  %260 = vst [vmem:[%s849_s4] sm:$0x1] (%p253_p5), %v729_v0 }
   0xf   : > { %s662_s27 = sshll.u32 %s855_s15, 7 }
  0x10   : > { %s784_s30 = scalar_lea.vmem %s847_s2, %s662_s27 }
  0x11 PF: > { %v673_v1 = vld [vmem:[%s241_s26 + $0x8] sm:$0xff]  ;;  %v672_v2 = vld [vmem:[%s241_s26] sm:$0xff]  ;;  %v666_v4 = vld [vmem:[%s776_s23 + $0x10] sm:$0xff]  ;;  %vm333_vm0 = vcmask 261120  }
  0x12   : > { %364 = vmatpush.bf16.msra.mxu0 %v673_v1  ;;  %674 = vmatpush.bf16.msra.mxu1 %v673_v1  ;;  %v664_v3 = vld [vmem:[%s776_s23] sm:$0xff]  ;;  %v670_v6 = vld [vmem:[%s776_s23 + $0x30] sm:$0xff]  ;;  %v665_v7 = vld [vmem:[%s776_s23 + $0x8] sm:$0xff] }
  0x13   : > { %675 = vmatpush.bf16.msra.mxu2 %v673_v1  ;;  %676 = vmatpush.bf16.msra.mxu3 %v673_v1  ;;  %v668_v5 = vld [vmem:[%s776_s23 + $0x20] sm:$0xff]  ;;  %v667_v8 = vld [vmem:[%s776_s23 + $0x18] sm:$0xff]  ;;  %v669_v9 = vld [vmem:[%s776_s23 + $0x28] sm:$0xff] }
  0x14   : > { %v671_v10 = vld [vmem:[%s776_s23 + $0x38] sm:$0xff] }
  0x16   : > { %365 = vmatpush.bf16.msra.mxu0 %v672_v2  ;;  %677 = vmatpush.bf16.msra.mxu1 %v672_v2 }
  0x17   : > { %678 = vmatpush.bf16.msra.mxu2 %v672_v2  ;;  %679 = vmatpush.bf16.msra.mxu3 %v672_v2 }
  0x19   : > { %650 = vmatmul.msk.bf16.vlgmr.msra.gmra.mxu0 %vm333_vm0, %v664_v3  ;;  %652 = vmatmul.msk.bf16.vlgmr.msra.gmra.mxu1 %vm333_vm0, %v666_v4 }
  0x1a   : > { %654 = vmatmul.msk.bf16.vlgmr.msra.gmra.mxu2 %vm333_vm0, %v668_v5  ;;  %656 = vmatmul.msk.bf16.vlgmr.msra.gmra.mxu3 %vm333_vm0, %v670_v6 }
  0x29   : > { %651 = vmatmul.msk.bf16.gmra.mxu0 %vm333_vm0, %v665_v7  ;;  %653 = vmatmul.msk.bf16.gmra.mxu1 %vm333_vm0, %v667_v8 }
  0x2a   : > { %655 = vmatmul.msk.bf16.gmra.mxu2 %vm333_vm0, %v669_v9  ;;  %657 = vmatmul.msk.bf16.gmra.mxu3 %vm333_vm0, %v671_v10 }
  0x96   : > { %v367_v11 = vpop.f32.mrf.mxu0  ;;  %v377_v12 = vpop.f32.mrf.mxu1 }
  0x97   : > { %407 = vst [vmem:[%s784_s30] sm:$0xff] %v367_v11  ;;  %v448_v22 = vmul.f32 %v367_v11, %v367_v11  ;;  %v452_v34 = vmul.f32 %v377_v12, %v377_v12 }
  0x98   : > { %411 = vst [vmem:[%s784_s30 + $0x20] sm:$0xff] %v377_v12 }
  0x9d   : > { %v387_v13 = vpop.f32.mrf.mxu2  ;;  %v397_v14 = vpop.f32.mrf.mxu3 }
  0x9e   : > { %v369_v15 = vpop.f32.mrf.mxu0  ;;  %v379_v16 = vpop.f32.mrf.mxu1  ;;  %415 = vst [vmem:[%s784_s30 + $0x40] sm:$0xff] %v387_v13  ;;  %v456_v48 = vmul.f32 %v387_v13, %v387_v13  ;;  %v460_v60 = vmul.f32 %v397_v14, %v397_v14 }
  0x9f   : > { %408 = vst [vmem:[%s784_s30 + $0x8] sm:$0xff] %v369_v15  ;;  %v449_v21 = vmul.f32 %v369_v15, %v369_v15  ;;  %v424_v23 = vadd.f32 %v369_v15, %v367_v11  ;;  %v453_v37 = vmul.f32 %v379_v16, %v379_v16 }
  0xa0   : > { %412 = vst [vmem:[%s784_s30 + $0x28] sm:$0xff] %v379_v16 }
  0xa1   : > { %419 = vst [vmem:[%s784_s30 + $0x60] sm:$0xff] %v397_v14  ;;  %v464_v25 = vadd.f32 %v449_v21, %v448_v22  ;;  %v447_v21 = vld [vmem:[%s849_s4] sm:$0x1] }
  0xa5   : > { %v389_v17 = vpop.f32.mrf.mxu2  ;;  %v399_v18 = vpop.f32.mrf.mxu3 }
  0xa6   : > { %v372_v19 = vpop.f32.mrf.mxu0  ;;  %v382_v20 = vpop.f32.mrf.mxu1  ;;  %416 = vst [vmem:[%s784_s30 + $0x48] sm:$0xff] %v389_v17  ;;  %v457_v51 = vmul.f32 %v389_v17, %v389_v17  ;;  %v461_v63 = vmul.f32 %v399_v18, %v399_v18 }
  0xa7   : > { %409 = vst [vmem:[%s784_s30 + $0x10] sm:$0xff] %v372_v19  ;;  %v450_v24 = vmul.f32 %v372_v19, %v372_v19  ;;  %v425_v26 = vadd.f32 %v424_v23, %v372_v19  ;;  %v454_v40 = vmul.f32 %v382_v20, %v382_v20 }
  0xa8   : > { %413 = vst [vmem:[%s784_s30 + $0x30] sm:$0xff] %v382_v20 }
  0xa9   : > { %420 = vst [vmem:[%s784_s30 + $0x68] sm:$0xff] %v399_v18  ;;  %v465_v31 = vadd.f32 %v464_v25, %v450_v24 }
  0xad   : > { %v392_v27 = vpop.f32.mrf.mxu2  ;;  %v402_v28 = vpop.f32.mrf.mxu3 }
  0xae   : > { %v374_v29 = vpop.f32.mrf.mxu0  ;;  %v384_v30 = vpop.f32.mrf.mxu1  ;;  %417 = vst [vmem:[%s784_s30 + $0x50] sm:$0xff] %v392_v27  ;;  %v458_v55 = vmul.f32 %v392_v27, %v392_v27  ;;  %v462_v3 = vmul.f32 %v402_v28, %v402_v28 }
  0xaf   : > { %410 = vst [vmem:[%s784_s30 + $0x18] sm:$0xff] %v374_v29  ;;  %v426_v32 = vadd.f32 %v425_v26, %v374_v29  ;;  %v451_v33 = vmul.f32 %v374_v29, %v374_v29  ;;  %v455_v46 = vmul.f32 %v384_v30, %v384_v30 }
  0xb0   : > { %414 = vst [vmem:[%s784_s30 + $0x38] sm:$0xff] %v384_v30 }
  0xb1   : > { %v427_v35 = vadd.f32 %v426_v32, %v377_v12  ;;  %v466_v36 = vadd.f32 %v465_v31, %v451_v33  ;;  %421 = vst [vmem:[%s784_s30 + $0x70] sm:$0xff] %v402_v28 }
  0xb3   : > { %v467_v38 = vadd.f32 %v466_v36, %v452_v34  ;;  %v428_v39 = vadd.f32 %v427_v35, %v379_v16 }
  0xb5   : > { %v429_v41 = vadd.f32 %v428_v39, %v382_v20  ;;  %v468_v42 = vadd.f32 %v467_v38, %v453_v37  ;;  %v394_v43 = vpop.f32.mrf.mxu2  ;;  %v404_v44 = vpop.f32.mrf.mxu3 }
  0xb6   : > { %418 = vst [vmem:[%s784_s30 + $0x58] sm:$0xff] %v394_v43  ;;  %v459_v59 = vmul.f32 %v394_v43, %v394_v43  ;;  %v463_v7 = vmul.f32 %v404_v44, %v404_v44 }
  0xb7   : > { %v430_v45 = vadd.f32 %v429_v41, %v384_v30  ;;  %v469_v47 = vadd.f32 %v468_v42, %v454_v40  ;;  %422 = vst [vmem:[%s784_s30 + $0x78] sm:$0xff] %v404_v44 }
  0xb9   : > { %v431_v49 = vadd.f32 %v430_v45, %v387_v13  ;;  %v470_v50 = vadd.f32 %v469_v47, %v455_v46 }
  0xbb   : > { %v471_v52 = vadd.f32 %v470_v50, %v456_v48  ;;  %v432_v53 = vadd.f32 %v431_v49, %v389_v17 }
  0xbd   : > { %v433_v54 = vadd.f32 %v432_v53, %v392_v27  ;;  %v472_v56 = vadd.f32 %v471_v52, %v457_v51 }
  0xbf   : > { %v473_v57 = vadd.f32 %v472_v56, %v458_v55  ;;  %v434_v58 = vadd.f32 %v433_v54, %v394_v43 }
  0xc1   : > { %v435_v61 = vadd.f32 %v434_v58, %v397_v14  ;;  %v474_v62 = vadd.f32 %v473_v57, %v459_v59 }
  0xc3   : > { %v475_v0 = vadd.f32 %v474_v62, %v460_v60  ;;  %v436_v1 = vadd.f32 %v435_v61, %v399_v18  ;;  %v423_v18 = vld [vmem:[%s848_s3] sm:$0x1] }
  0xc5   : > { %v437_v2 = vadd.f32 %v436_v1, %v402_v28  ;;  %v476_v4 = vadd.f32 %v475_v0, %v461_v63 }
  0xc7   : > { %v477_v5 = vadd.f32 %v476_v4, %v462_v3  ;;  %v438_v6 = vadd.f32 %v437_v2, %v404_v44 }
  0xc9   : > { %v439_v8 = vrot.slane %v438_v6, 4  ;;  %v478_v9 = vadd.f32 %v477_v5, %v463_v7 }
  0xcb   : > { %v440_v10 = vadd.f32 %v439_v8, %v438_v6  ;;  %v479_v11 = vrot.slane %v478_v9, 4 }
  0xcd   : > { %v441_v12 = vrot.slane %v440_v10, 2  ;;  %v480_v13 = vadd.f32 %v479_v11, %v478_v9 }
  0xcf   : > { %v442_v15 = vadd.f32 %v441_v12, %v440_v10  ;;  %v481_v16 = vrot.slane %v480_v13, 2 }
  0xd1   : > { %v443_v17 = vrot.slane %v442_v15, 1  ;;  %v482_v14 = vadd.f32 %v481_v16, %v480_v13 }
  0xd3   : > { %v444_v19 = vadd.f32 %v443_v17, %v442_v15  ;;  %v483_v20 = vrot.slane %v482_v14, 1 }
  0xd5   : > { %v445_v22 = vadd.f32 %v444_v19, %v423_v18  ;;  %v484_v23 = vadd.f32 %v483_v20, %v482_v14 }
  0xd7   : > { %446 = vst [vmem:[%s848_s3] sm:$0x1] %v445_v22  ;;  %v485_v24 = vadd.f32 %v484_v23, %v447_v21 }
  0xd9   : > { %486 = vst [vmem:[%s849_s4] sm:$0x1] %v485_v24 }
  0xda PF: > { %s15_s17 = sadd.s32 1, %s727_s17   ;;  %s850_s15 = smov %s723_s16 }
  0xdb   : > { %p12_p6 = scmp.ge.s32.totalorder %s15_s17, 6   ;;  %s851_s16 = smov %s853_s18 }
  0xdd   :  { %14 = sbr.rel (!%p12_p6) target bundleno = 2 (0x2), region = 81 }

</bundles_post_ra>
